<compile_context>
chip_gen: v7x
topology: tpu7x:2x2x1
jax: 0.10.0
libtpu: 0.0.40
codegen_flags: <defaults>
</compile_context>

<pallas_src>
import functools

import jax
import jax.numpy as jnp
import numpy as np
from jax import lax
from jax.experimental import pallas as pl
from jax.experimental.pallas import tpu as pltpu


def _round_up(v, m):
    return (v + m - 1) // m * m


def _one_hot_bf16(idx, n_rows, n_groups):
    # idx: [n_rows, 1] int32 -> [n_rows, n_groups] bf16 one-hot (exact in bf16).
    iota = lax.broadcasted_iota(jnp.int32, (n_rows, n_groups), 1)
    return (iota == idx).astype(jnp.bfloat16)


def _stats_kernel(n_valid, n_ae, g_a, g_e, tile_n, num_tiles, eps,
                  x_ref, dist_ref, aidx_ref, eidx_ref,
                  wd_ref, wa_ref, we_ref, gamma_ref, beta_ref,
                  proj_a_ref, proj_e_ref, bn_out_ref,
                  acc_a_ref, acc_e_ref, cnt_a_ref, cnt_e_ref, bn_acc_ref):
    phase = pl.program_id(0)
    tile = pl.program_id(1)

    @pl.when(jnp.logical_and(phase == 0, tile == 0))
    def _init():
        acc_a_ref[...] = jnp.zeros_like(acc_a_ref)
        acc_e_ref[...] = jnp.zeros_like(acc_e_ref)
        cnt_a_ref[...] = jnp.zeros_like(cnt_a_ref)
        cnt_e_ref[...] = jnp.zeros_like(cnt_e_ref)
        bn_acc_ref[...] = jnp.zeros_like(bn_acc_ref)

    oh_a = _one_hot_bf16(aidx_ref[...], tile_n, g_a)
    oh_e = _one_hot_bf16(eidx_ref[...], tile_n, g_e)
    row_dims = (((0,), (0,)), ((), ()))          # contract over the node axis

    @pl.when(phase == 0)
    def _pool():
        # Pool the full F columns (the unused half of each table is discarded
        # at projection time) -> no lane-misaligned per-tile slicing of x.
        xb = x_ref[...].astype(jnp.bfloat16)                    # [tile_n, F]
        ones = jnp.ones((tile_n, 1), jnp.bfloat16)
        acc_a_ref[...] += lax.dot_general(oh_a, xb, row_dims,
                                          preferred_element_type=jnp.float32)
        acc_e_ref[...] += lax.dot_general(oh_e, xb, row_dims,
                                          preferred_element_type=jnp.float32)
        cnt_a_ref[...] += lax.dot_general(oh_a, ones, row_dims,
                                          preferred_element_type=jnp.float32)
        cnt_e_ref[...] += lax.dot_general(oh_e, ones, row_dims,
                                          preferred_element_type=jnp.float32)

    @pl.when(jnp.logical_and(phase == 1, tile == 0))
    def _project():
        def project(acc, cnt, w_ref, col0):
            inv = 1.0 / jnp.maximum(cnt, 1.0)                   # [g, 1], exact
            mean_relu = jnp.maximum(acc[:, col0:col0 + n_ae], 0.0) * inv
            return jnp.dot(mean_relu.astype(jnp.bfloat16), w_ref[...],
                           preferred_element_type=jnp.float32)
        proj_a_ref[...] = project(acc_a_ref[...], cnt_a_ref[...],
                                  wa_ref, 0).astype(jnp.bfloat16)
        proj_e_ref[...] = project(acc_e_ref[...], cnt_e_ref[...],
                                  we_ref, n_ae).astype(jnp.bfloat16)

    @pl.when(phase == 1)
    def _bn_stats():
        # fc1 WITHOUT its bias: the bias cancels exactly under training-mode
        # BatchNorm, improves the one-pass variance's cancellation, and makes
        # padded rows (idx == -1, zero dist) contribute exactly 0 -> no mask.
        h = (jnp.dot(dist_ref[...], wd_ref[...],
                     preferred_element_type=jnp.float32)
             + jnp.dot(oh_a, proj_a_ref[...], preferred_element_type=jnp.float32)
             + jnp.dot(oh_e, proj_e_ref[...], preferred_element_type=jnp.float32))
        bn_acc_ref[...] += jnp.concatenate(
            [jnp.sum(h, axis=0, keepdims=True),
             jnp.sum(h * h, axis=0, keepdims=True)], axis=0)

    @pl.when(jnp.logical_and(phase == 1, tile == num_tiles - 1))
    def _finalize_bn():
        inv_n = 1.0 / float(n_valid)
        mu = bn_acc_ref[0:1, :] * inv_n
        var = jnp.maximum(bn_acc_ref[1:2, :] * inv_n - mu * mu, 0.0)
        scale = gamma_ref[...] * lax.rsqrt(var + eps)
        shift = beta_ref[...] - mu * scale
        bn_out_ref[...] = jnp.concatenate([scale, shift], axis=0)


def _apply_kernel(g_a, g_e, tile_n,
                  x_ref, dist_ref, aidx_ref, eidx_ref,
                  wd_ref, proj_a_ref, proj_e_ref, bn_ref, out_ref):
    oh_a = _one_hot_bf16(aidx_ref[...], tile_n, g_a)
    oh_e = _one_hot_bf16(eidx_ref[...], tile_n, g_e)
    h = (jnp.dot(dist_ref[...], wd_ref[...], preferred_element_type=jnp.float32)
         + jnp.dot(oh_a, proj_a_ref[...], preferred_element_type=jnp.float32)
         + jnp.dot(oh_e, proj_e_ref[...], preferred_element_type=jnp.float32))
    scale = bn_ref[0:1, :]
    shift = bn_ref[1:2, :]
    out_ref[...] = jnp.maximum(h * scale + shift + x_ref[...], 0.0)


def prepare_params(params, n_dist_embed, n_atom_embed):
    """One-time parameter prep: split/transpose fc1, cast MXU weights to bf16.

    The fc1 bias is intentionally not used: it cancels exactly under
    training-mode BatchNorm (shift = beta - mu*scale absorbs it).
    """
    n_de, n_ae = n_dist_embed, n_atom_embed
    W = jnp.asarray(params["W"], jnp.float32)                # [2*n_ae, n_de+2*n_ae]
    return {
        "wd": W[:, :n_de].T.astype(jnp.bfloat16),                     # [n_de, 2*n_ae]
        "wa": W[:, n_de:n_de + n_ae].T.astype(jnp.bfloat16),          # [n_ae, 2*n_ae]
        "we": W[:, n_de + n_ae:].T.astype(jnp.bfloat16),              # [n_ae, 2*n_ae]
        "gamma": jnp.asarray(params["gamma"], jnp.float32).reshape(1, -1),
        "beta": jnp.asarray(params["beta"], jnp.float32).reshape(1, -1),
    }


@functools.partial(jax.jit,
                   static_argnames=("n_atom_groups", "n_ele_groups",
                                    "eps", "tile_n"))
def dist_layer(x, dist_feat, atom_idx, ele_idx, prepared,
               n_atom_groups, n_ele_groups, eps=1e-5, tile_n=1024):
    n, f = x.shape
    n_ae = f // 2
    n_de = dist_feat.shape[1]

    tile_n = max(8, min(int(tile_n), _round_up(n, 8)))
    tile_n = _round_up(tile_n, 8)
    n_pad = _round_up(n, tile_n)
    # Keep >=2 row tiles so the 'parallel' apply grid can occupy both
    # TensorCores on megacore parts (v7x); negligible cost on single-TC chips.
    if n_pad // tile_n < 2 and n > 8:
        tile_n = _round_up((n + 1) // 2, 8)
        n_pad = _round_up(n, tile_n)
    num_tiles = n_pad // tile_n
    g_a = _round_up(max(int(n_atom_groups), 1), 8)
    g_e = _round_up(max(int(n_ele_groups), 1), 8)

    x32 = jnp.asarray(x, jnp.float32)
    d_bf = jnp.asarray(dist_feat, jnp.bfloat16)       # MXU operand only: cast once
    ai = jnp.asarray(atom_idx, jnp.int32).reshape(-1, 1)
    ei = jnp.asarray(ele_idx, jnp.int32).reshape(-1, 1)
    if n_pad != n:
        pad = n_pad - n
        x32 = jnp.pad(x32, ((0, pad), (0, 0)))
        d_bf = jnp.pad(d_bf, ((0, pad), (0, 0)))
        ai = jnp.pad(ai, ((0, pad), (0, 0)), constant_values=-1)   # zero one-hot
        ei = jnp.pad(ei, ((0, pad), (0, 0)), constant_values=-1)

    wd, wa, we = prepared["wd"], prepared["wa"], prepared["we"]
    gamma, beta = prepared["gamma"], prepared["beta"]

    vmem_cap = 64 * 1024 * 1024

    # ---- passes 1+2: group means, BN batch statistics, BN scale/shift -------
    # x is only needed in phase 0, dist only in phase 1 -> pin the unused one
    # at block 0 so it is not re-streamed from HBM on the other phase.
    proj_a, proj_e, bn = pl.pallas_call(
        functools.partial(_stats_kernel, n, n_ae, g_a, g_e, tile_n,
                          num_tiles, eps),
        grid=(2, num_tiles),
        in_specs=[
            pl.BlockSpec((tile_n, f), lambda p, t: (t * (1 - p), 0)),   # x
            pl.BlockSpec((tile_n, n_de), lambda p, t: (t * p, 0)),      # dist (bf16)
            pl.BlockSpec((tile_n, 1), lambda p, t: (t, 0)),             # atom_idx
            pl.BlockSpec((tile_n, 1), lambda p, t: (t, 0)),             # ele_idx
            pl.BlockSpec((n_de, f), lambda p, t: (0, 0)),               # wd
            pl.BlockSpec((n_ae, f), lambda p, t: (0, 0)),               # wa
            pl.BlockSpec((n_ae, f), lambda p, t: (0, 0)),               # we
            pl.BlockSpec((1, f), lambda p, t: (0, 0)),                  # gamma
            pl.BlockSpec((1, f), lambda p, t: (0, 0)),                  # beta
        ],
        out_specs=(
            pl.BlockSpec((g_a, f), lambda p, t: (0, 0)),
            pl.BlockSpec((g_e, f), lambda p, t: (0, 0)),
            pl.BlockSpec((2, f), lambda p, t: (0, 0)),
        ),
        out_shape=(
            jax.ShapeDtypeStruct((g_a, f), jnp.bfloat16),   # relu(group_mean)@Wa
            jax.ShapeDtypeStruct((g_e, f), jnp.bfloat16),   # relu(group_mean)@We
            jax.ShapeDtypeStruct((2, f), jnp.float32),      # [bn scale; bn shift]
        ),
        scratch_shapes=[
            pltpu.VMEM((g_a, f), jnp.float32),              # atom group sums
            pltpu.VMEM((g_e, f), jnp.float32),              # ele  group sums
            pltpu.VMEM((g_a, 1), jnp.float32),              # atom group counts
            pltpu.VMEM((g_e, 1), jnp.float32),              # ele  group counts
            pltpu.VMEM((2, f), jnp.float32),                # [sum(h); sum(h*h)]
        ],
        compiler_params=pltpu.CompilerParams(
            dimension_semantics=("arbitrary", "arbitrary"),
            vmem_limit_bytes=vmem_cap),
    )(x32, d_bf, ai, ei, wd, wa, we, gamma, beta)

    # ---- pass 3: fc1 + BN (as scale/shift) + residual + relu ----------------
    out = pl.pallas_call(
        functools.partial(_apply_kernel, g_a, g_e, tile_n),
        grid=(num_tiles,),
        in_specs=[
            pl.BlockSpec((tile_n, f), lambda t: (t, 0)),        # x
            pl.BlockSpec((tile_n, n_de), lambda t: (t, 0)),     # dist (bf16)
            pl.BlockSpec((tile_n, 1), lambda t: (t, 0)),        # atom_idx
            pl.BlockSpec((tile_n, 1), lambda t: (t, 0)),        # ele_idx
            pl.BlockSpec((n_de, f), lambda t: (0, 0)),          # wd
            pl.BlockSpec((g_a, f), lambda t: (0, 0)),           # proj_a
            pl.BlockSpec((g_e, f), lambda t: (0, 0)),           # proj_e
            pl.BlockSpec((2, f), lambda t: (0, 0)),             # bn scale/shift
        ],
        out_specs=pl.BlockSpec((tile_n, f), lambda t: (t, 0)),
        out_shape=jax.ShapeDtypeStruct((n_pad, f), jnp.float32),
        compiler_params=pltpu.CompilerParams(
            dimension_semantics=("parallel",),
            vmem_limit_bytes=vmem_cap),
    )(x32, d_bf, ai, ei, wd, proj_a, proj_e, bn)

    return out[:n] if n_pad != n else out


def ref_dist_layer(x, dist_feat, atom_idx, ele_idx, params,
                   n_atom_groups, n_ele_groups, eps=1e-5):
    """Pure-JAX f32 reference mirroring the PyTorch forward."""
    n_ae = x.shape[1] // 2
    W, b, gamma, beta = params["W"], params["b"], params["gamma"], params["beta"]

    def gmp(feat, idx, g):
        sums = jnp.zeros((g, feat.shape[1]), feat.dtype).at[idx].add(feat)
        cnt = jnp.zeros((g,), feat.dtype).at[idx].add(1.0)
        return sums / jnp.maximum(cnt, 1.0)[:, None]

    ga = jax.nn.relu(gmp(x[:, :n_ae], atom_idx, n_atom_groups))[atom_idx]
    ge = jax.nn.relu(gmp(x[:, n_ae:], ele_idx, n_ele_groups))[ele_idx]
    h = jnp.concatenate([dist_feat, ga, ge], axis=1) @ W.T + b
    mu = h.mean(0)
    var = ((h - mu) ** 2).mean(0)
    h = (h - mu) / jnp.sqrt(var + eps) * gamma + beta
    return jax.nn.relu(h + x)


if __name__ == "__main__":
    def run_case(n_nodes, n_de, n_ae, n_ag, n_eg, tile_n):
        key = jax.random.PRNGKey(0)
        kx, kd, ka, ke, kw, kb, kg, kbt = jax.random.split(key, 8)
        x = jax.random.normal(kx, (n_nodes, 2 * n_ae), jnp.float32)
        dist_feat = jax.random.normal(kd, (n_nodes, n_de), jnp.float32)
        atom_idx = jax.random.randint(ka, (n_nodes,), 0, n_ag, jnp.int32)
        ele_idx = jax.random.randint(ke, (n_nodes,), 0, n_eg, jnp.int32)
        params = {
            "W": 0.1 * jax.random.normal(kw, (2 * n_ae, n_de + 2 * n_ae),
                                         jnp.float32),
            "b": 0.1 * jax.random.normal(kb, (2 * n_ae,), jnp.float32),
            "gamma": 1.0 + 0.1 * jax.random.normal(kg, (2 * n_ae,), jnp.float32),
            "beta": 0.1 * jax.random.normal(kbt, (2 * n_ae,), jnp.float32),
        }
        prepared = prepare_params(params, n_de, n_ae)
        out = dist_layer(x, dist_feat, atom_idx, ele_idx, prepared,
                         n_atom_groups=n_ag, n_ele_groups=n_eg, tile_n=tile_n)
        out = jax.block_until_ready(out)
        ref = ref_dist_layer(x, dist_feat, atom_idx, ele_idx, params, n_ag, n_eg)
        # bf16 MXU operands (f32 accumulation) vs the pure-f32 reference, with
        # BatchNorm amplification -> loose-ish tolerance.
        np.testing.assert_allclose(np.asarray(out), np.asarray(ref),
                                   rtol=5e-2, atol=5e-2)

    # multi-tile grid, N divisible by the tile (no row padding)
    run_case(n_nodes=16, n_de=8, n_ae=16, n_ag=4, n_eg=3, tile_n=8)
    # ragged N -> row padding path exercised (padded rows contribute 0 to BN)
    run_case(n_nodes=20, n_de=8, n_ae=16, n_ag=5, n_eg=3, tile_n=16)
    print("KERNEL_OK")
</pallas_src>

<mosaic_0001>
module attributes {stable_mosaic.version = 11 : i64} {
  func.func @_apply_kernel(%arg0: i32, %arg1: memref<8x32xf32, #tpu.memory_space<vmem>>, %arg2: memref<8x8xbf16, #tpu.memory_space<vmem>>, %arg3: memref<8x1xi32, #tpu.memory_space<vmem>>, %arg4: memref<8x1xi32, #tpu.memory_space<vmem>>, %arg5: memref<8x32xbf16, #tpu.memory_space<vmem>>, %arg6: memref<8x32xbf16, #tpu.memory_space<vmem>>, %arg7: memref<8x32xbf16, #tpu.memory_space<vmem>>, %arg8: memref<2x32xf32, #tpu.memory_space<vmem>>, %arg9: memref<8x32xf32, #tpu.memory_space<vmem>>) attributes {dimension_semantics = [#tpu.dimension_semantics<parallel>], iteration_bounds = array<i64: 2>, scalar_prefetch = 0 : i64, scratch_operands = 0 : i64, tpu.core_type = #tpu.core_type<tc>, window_params = [{transform_indices = @transform_0, window_bounds = array<i64: 8, 32>}, {transform_indices = @transform_1, window_bounds = array<i64: 8, 8>}, {transform_indices = @transform_2, window_bounds = array<i64: 8, 1>}, {transform_indices = @transform_3, window_bounds = array<i64: 8, 1>}, {pipeline_mode = #tpu.pipeline_mode<synchronous>, transform_indices = @transform_4, window_bounds = array<i64: 8, 32>}, {pipeline_mode = #tpu.pipeline_mode<synchronous>, transform_indices = @transform_5, window_bounds = array<i64: 8, 32>}, {pipeline_mode = #tpu.pipeline_mode<synchronous>, transform_indices = @transform_6, window_bounds = array<i64: 8, 32>}, {pipeline_mode = #tpu.pipeline_mode<synchronous>, transform_indices = @transform_7, window_bounds = array<i64: 2, 32>}, {transform_indices = @transform_8, window_bounds = array<i64: 8, 32>}]} {
    %c0 = arith.constant 0 : index
    %c0_0 = arith.constant 0 : index
    %0 = vector.load %arg3[%c0, %c0_0] : memref<8x1xi32, #tpu.memory_space<vmem>>, vector<8x1xi32>
    %1 = tpu.iota {dimensions = array<i32: 1>} : vector<8x8xi32>
    %2 = vector.broadcast %0 : vector<8x1xi32> to vector<8x8xi32>
    %3 = arith.cmpi eq, %1, %2 : vector<8x8xi32>
    %4 = arith.extui %3 : vector<8x8xi1> to vector<8x8xi32>
    %5 = arith.sitofp %4 : vector<8x8xi32> to vector<8x8xf32>
    %6 = arith.truncf %5 : vector<8x8xf32> to vector<8x8xbf16>
    %c0_1 = arith.constant 0 : index
    %c0_2 = arith.constant 0 : index
    %7 = vector.load %arg4[%c0_1, %c0_2] : memref<8x1xi32, #tpu.memory_space<vmem>>, vector<8x1xi32>
    %8 = tpu.iota {dimensions = array<i32: 1>} : vector<8x8xi32>
    %9 = vector.broadcast %7 : vector<8x1xi32> to vector<8x8xi32>
    %10 = arith.cmpi eq, %8, %9 : vector<8x8xi32>
    %11 = arith.extui %10 : vector<8x8xi1> to vector<8x8xi32>
    %12 = arith.sitofp %11 : vector<8x8xi32> to vector<8x8xf32>
    %13 = arith.truncf %12 : vector<8x8xf32> to vector<8x8xbf16>
    %c0_3 = arith.constant 0 : index
    %c0_4 = arith.constant 0 : index
    %14 = vector.load %arg2[%c0_3, %c0_4] : memref<8x8xbf16, #tpu.memory_space<vmem>>, vector<8x8xbf16>
    %c0_5 = arith.constant 0 : index
    %c0_6 = arith.constant 0 : index
    %15 = vector.load %arg5[%c0_5, %c0_6] : memref<8x32xbf16, #tpu.memory_space<vmem>>, vector<8x32xbf16>
    %cst = arith.constant dense<0.000000e+00> : vector<8x32xf32>
    %16 = tpu.matmul %14, %15, %cst {dimension_numbers = #tpu.dot_dimension_numbers<[1], [0], [0], [1], [0, 0, 1, 1], [], []>} : vector<8x8xbf16>, vector<8x32xbf16>, vector<8x32xf32> -> vector<8x32xf32>
    %c0_7 = arith.constant 0 : index
    %c0_8 = arith.constant 0 : index
    %17 = vector.load %arg6[%c0_7, %c0_8] : memref<8x32xbf16, #tpu.memory_space<vmem>>, vector<8x32xbf16>
    %cst_9 = arith.constant dense<0.000000e+00> : vector<8x32xf32>
    %18 = tpu.matmul %6, %17, %cst_9 {dimension_numbers = #tpu.dot_dimension_numbers<[1], [0], [0], [1], [0, 0, 1, 1], [], []>} : vector<8x8xbf16>, vector<8x32xbf16>, vector<8x32xf32> -> vector<8x32xf32>
    %19 = arith.addf %16, %18 : vector<8x32xf32>
    %c0_10 = arith.constant 0 : index
    %c0_11 = arith.constant 0 : index
    %20 = vector.load %arg7[%c0_10, %c0_11] : memref<8x32xbf16, #tpu.memory_space<vmem>>, vector<8x32xbf16>
    %cst_12 = arith.constant dense<0.000000e+00> : vector<8x32xf32>
    %21 = tpu.matmul %13, %20, %cst_12 {dimension_numbers = #tpu.dot_dimension_numbers<[1], [0], [0], [1], [0, 0, 1, 1], [], []>} : vector<8x8xbf16>, vector<8x32xbf16>, vector<8x32xf32> -> vector<8x32xf32>
    %22 = arith.addf %19, %21 : vector<8x32xf32>
    %c0_13 = arith.constant 0 : index
    %c0_14 = arith.constant 0 : index
    %23 = vector.load %arg8[%c0_13, %c0_14] : memref<2x32xf32, #tpu.memory_space<vmem>>, vector<1x32xf32>
    %c1 = arith.constant 1 : index
    %c0_15 = arith.constant 0 : index
    %24 = vector.load %arg8[%c1, %c0_15] : memref<2x32xf32, #tpu.memory_space<vmem>>, vector<1x32xf32>
    %25 = vector.broadcast %23 : vector<1x32xf32> to vector<8x32xf32>
    %26 = arith.mulf %22, %25 : vector<8x32xf32>
    %27 = vector.broadcast %24 : vector<1x32xf32> to vector<8x32xf32>
    %28 = arith.addf %26, %27 : vector<8x32xf32>
    %c0_16 = arith.constant 0 : index
    %c0_17 = arith.constant 0 : index
    %29 = vector.load %arg1[%c0_16, %c0_17] : memref<8x32xf32, #tpu.memory_space<vmem>>, vector<8x32xf32>
    %30 = arith.addf %28, %29 : vector<8x32xf32>
    %cst_18 = arith.constant 0.000000e+00 : f32
    %31 = vector.broadcast %cst_18 : f32 to vector<8x32xf32>
    %32 = arith.maximumf %30, %31 : vector<8x32xf32>
    %c0_19 = arith.constant 0 : index
    %c0_20 = arith.constant 0 : index
    %33 = vector.load %arg9[%c0_19, %c0_20] : memref<8x32xf32, #tpu.memory_space<vmem>>, vector<8x32xf32>
    tpu.vector_store %arg9[%c0_19, %c0_20], %32 {strides = array<i32>} : memref<8x32xf32, #tpu.memory_space<vmem>>, vector<8x32xf32>,
    return
  }
  func.func @transform_0(%arg0: i32) -> (i32, i32) {
    %c0_i32 = arith.constant 0 : i32
    %c0_i32_0 = arith.constant 0 : i32
    return %arg0, %c0_i32 : i32, i32
  }
  func.func @transform_1(%arg0: i32) -> (i32, i32) {
    %c0_i32 = arith.constant 0 : i32
    %c0_i32_0 = arith.constant 0 : i32
    return %arg0, %c0_i32 : i32, i32
  }
  func.func @transform_2(%arg0: i32) -> (i32, i32) {
    %c0_i32 = arith.constant 0 : i32
    %c0_i32_0 = arith.constant 0 : i32
    return %arg0, %c0_i32 : i32, i32
  }
  func.func @transform_3(%arg0: i32) -> (i32, i32) {
    %c0_i32 = arith.constant 0 : i32
    %c0_i32_0 = arith.constant 0 : i32
    return %arg0, %c0_i32 : i32, i32
  }
  func.func @transform_4(%arg0: i32) -> (i32, i32) {
    %c0_i32 = arith.constant 0 : i32
    %c0_i32_0 = arith.constant 0 : i32
    %c0_i32_1 = arith.constant 0 : i32
    return %c0_i32, %c0_i32_0 : i32, i32
  }
  func.func @transform_5(%arg0: i32) -> (i32, i32) {
    %c0_i32 = arith.constant 0 : i32
    %c0_i32_0 = arith.constant 0 : i32
    %c0_i32_1 = arith.constant 0 : i32
    return %c0_i32, %c0_i32_0 : i32, i32
  }
  func.func @transform_6(%arg0: i32) -> (i32, i32) {
    %c0_i32 = arith.constant 0 : i32
    %c0_i32_0 = arith.constant 0 : i32
    %c0_i32_1 = arith.constant 0 : i32
    return %c0_i32, %c0_i32_0 : i32, i32
  }
  func.func @transform_7(%arg0: i32) -> (i32, i32) {
    %c0_i32 = arith.constant 0 : i32
    %c0_i32_0 = arith.constant 0 : i32
    %c0_i32_1 = arith.constant 0 : i32
    return %c0_i32, %c0_i32_0 : i32, i32
  }
  func.func @transform_8(%arg0: i32) -> (i32, i32) {
    %c0_i32 = arith.constant 0 : i32
    %c0_i32_0 = arith.constant 0 : i32
    return %arg0, %c0_i32 : i32, i32
  }
}

module attributes {stable_mosaic.version = 11 : i64} {
  func.func @_stats_kernel(%arg0: i32, %arg1: i32, %arg2: memref<8x32xf32, #tpu.memory_space<vmem>>, %arg3: memref<8x8xbf16, #tpu.memory_space<vmem>>, %arg4: memref<8x1xi32, #tpu.memory_space<vmem>>, %arg5: memref<8x1xi32, #tpu.memory_space<vmem>>, %arg6: memref<8x32xbf16, #tpu.memory_space<vmem>>, %arg7: memref<16x32xbf16, #tpu.memory_space<vmem>>, %arg8: memref<16x32xbf16, #tpu.memory_space<vmem>>, %arg9: memref<1x32xf32, #tpu.memory_space<vmem>>, %arg10: memref<1x32xf32, #tpu.memory_space<vmem>>, %arg11: memref<8x32xbf16, #tpu.memory_space<vmem>>, %arg12: memref<8x32xbf16, #tpu.memory_space<vmem>>, %arg13: memref<2x32xf32, #tpu.memory_space<vmem>>, %arg14: memref<8x32xf32, #tpu.memory_space<vmem>>, %arg15: memref<8x32xf32, #tpu.memory_space<vmem>>, %arg16: memref<8x1xf32, #tpu.memory_space<vmem>>, %arg17: memref<8x1xf32, #tpu.memory_space<vmem>>, %arg18: memref<2x32xf32, #tpu.memory_space<vmem>>) attributes {dimension_semantics = [#tpu.dimension_semantics<arbitrary>, #tpu.dimension_semantics<arbitrary>], iteration_bounds = array<i64: 2, 2>, scalar_prefetch = 0 : i64, scratch_operands = 5 : i64, tpu.core_type = #tpu.core_type<tc>, window_params = [{transform_indices = @transform_0, window_bounds = array<i64: 8, 32>}, {transform_indices = @transform_1, window_bounds = array<i64: 8, 8>}, {transform_indices = @transform_2, window_bounds = array<i64: 8, 1>}, {transform_indices = @transform_3, window_bounds = array<i64: 8, 1>}, {pipeline_mode = #tpu.pipeline_mode<synchronous>, transform_indices = @transform_4, window_bounds = array<i64: 8, 32>}, {pipeline_mode = #tpu.pipeline_mode<synchronous>, transform_indices = @transform_5, window_bounds = array<i64: 16, 32>}, {pipeline_mode = #tpu.pipeline_mode<synchronous>, transform_indices = @transform_6, window_bounds = array<i64: 16, 32>}, {pipeline_mode = #tpu.pipeline_mode<synchronous>, transform_indices = @transform_7, window_bounds = array<i64: 1, 32>}, {pipeline_mode = #tpu.pipeline_mode<synchronous>, transform_indices = @transform_8, window_bounds = array<i64: 1, 32>}, {pipeline_mode = #tpu.pipeline_mode<synchronous>, transform_indices = @transform_9, window_bounds = array<i64: 8, 32>}, {pipeline_mode = #tpu.pipeline_mode<synchronous>, transform_indices = @transform_10, window_bounds = array<i64: 8, 32>}, {pipeline_mode = #tpu.pipeline_mode<synchronous>, transform_indices = @transform_11, window_bounds = array<i64: 2, 32>}]} {
    %c0_i32 = arith.constant 0 : i32
    %0 = arith.cmpi eq, %arg0, %c0_i32 : i32
    %c0_i32_0 = arith.constant 0 : i32
    %1 = arith.cmpi eq, %arg1, %c0_i32_0 : i32
    %2 = arith.andi %0, %1 : i1
    %3 = arith.extui %2 : i1 to i32
    %c0_i32_1 = arith.constant 0 : i32
    %4 = arith.cmpi ne, %3, %c0_i32_1 : i32
    scf.if %4 {
      %cst = arith.constant 0.000000e+00 : f32
      %35 = vector.broadcast %cst : f32 to vector<8x32xf32>
      %c0_14 = arith.constant 0 : index
      %c0_15 = arith.constant 0 : index
      %36 = vector.load %arg14[%c0_14, %c0_15] : memref<8x32xf32, #tpu.memory_space<vmem>>, vector<8x32xf32>
      tpu.vector_store %arg14[%c0_14, %c0_15], %35 {strides = array<i32>} : memref<8x32xf32, #tpu.memory_space<vmem>>, vector<8x32xf32>,
      %cst_16 = arith.constant 0.000000e+00 : f32
      %37 = vector.broadcast %cst_16 : f32 to vector<8x32xf32>
      %c0_17 = arith.constant 0 : index
      %c0_18 = arith.constant 0 : index
      %38 = vector.load %arg15[%c0_17, %c0_18] : memref<8x32xf32, #tpu.memory_space<vmem>>, vector<8x32xf32>
      tpu.vector_store %arg15[%c0_17, %c0_18], %37 {strides = array<i32>} : memref<8x32xf32, #tpu.memory_space<vmem>>, vector<8x32xf32>,
      %cst_19 = arith.constant 0.000000e+00 : f32
      %39 = vector.broadcast %cst_19 : f32 to vector<8x1xf32>
      %c0_20 = arith.constant 0 : index
      %c0_21 = arith.constant 0 : index
      %40 = vector.load %arg16[%c0_20, %c0_21] : memref<8x1xf32, #tpu.memory_space<vmem>>, vector<8x1xf32>
      tpu.vector_store %arg16[%c0_20, %c0_21], %39 {strides = array<i32>} : memref<8x1xf32, #tpu.memory_space<vmem>>, vector<8x1xf32>,
      %cst_22 = arith.constant 0.000000e+00 : f32
      %41 = vector.broadcast %cst_22 : f32 to vector<8x1xf32>
      %c0_23 = arith.constant 0 : index
      %c0_24 = arith.constant 0 : index
      %42 = vector.load %arg17[%c0_23, %c0_24] : memref<8x1xf32, #tpu.memory_space<vmem>>, vector<8x1xf32>
      tpu.vector_store %arg17[%c0_23, %c0_24], %41 {strides = array<i32>} : memref<8x1xf32, #tpu.memory_space<vmem>>, vector<8x1xf32>,
      %cst_25 = arith.constant 0.000000e+00 : f32
      %43 = vector.broadcast %cst_25 : f32 to vector<2x32xf32>
      %c0_26 = arith.constant 0 : index
      %c0_27 = arith.constant 0 : index
      %44 = vector.load %arg18[%c0_26, %c0_27] : memref<2x32xf32, #tpu.memory_space<vmem>>, vector<2x32xf32>
      tpu.vector_store %arg18[%c0_26, %c0_27], %43 {strides = array<i32>} : memref<2x32xf32, #tpu.memory_space<vmem>>, vector<2x32xf32>,
    } else {
    }
    %c0 = arith.constant 0 : index
    %c0_2 = arith.constant 0 : index
    %5 = vector.load %arg4[%c0, %c0_2] : memref<8x1xi32, #tpu.memory_space<vmem>>, vector<8x1xi32>
    %6 = tpu.iota {dimensions = array<i32: 1>} : vector<8x8xi32>
    %7 = vector.broadcast %5 : vector<8x1xi32> to vector<8x8xi32>
    %8 = arith.cmpi eq, %6, %7 : vector<8x8xi32>
    %9 = arith.extui %8 : vector<8x8xi1> to vector<8x8xi32>
    %10 = arith.sitofp %9 : vector<8x8xi32> to vector<8x8xf32>
    %11 = arith.truncf %10 : vector<8x8xf32> to vector<8x8xbf16>
    %c0_3 = arith.constant 0 : index
    %c0_4 = arith.constant 0 : index
    %12 = vector.load %arg5[%c0_3, %c0_4] : memref<8x1xi32, #tpu.memory_space<vmem>>, vector<8x1xi32>
    %13 = tpu.iota {dimensions = array<i32: 1>} : vector<8x8xi32>
    %14 = vector.broadcast %12 : vector<8x1xi32> to vector<8x8xi32>
    %15 = arith.cmpi eq, %13, %14 : vector<8x8xi32>
    %16 = arith.extui %15 : vector<8x8xi1> to vector<8x8xi32>
    %17 = arith.sitofp %16 : vector<8x8xi32> to vector<8x8xf32>
    %18 = arith.truncf %17 : vector<8x8xf32> to vector<8x8xbf16>
    %c0_i32_5 = arith.constant 0 : i32
    %19 = arith.cmpi eq, %arg0, %c0_i32_5 : i32
    %20 = arith.extui %19 : i1 to i32
    %c0_i32_6 = arith.constant 0 : i32
    %21 = arith.cmpi ne, %20, %c0_i32_6 : i32
    scf.if %21 {
      %c0_14 = arith.constant 0 : index
      %c0_15 = arith.constant 0 : index
      %35 = vector.load %arg2[%c0_14, %c0_15] : memref<8x32xf32, #tpu.memory_space<vmem>>, vector<8x32xf32>
      %36 = arith.truncf %35 : vector<8x32xf32> to vector<8x32xbf16>
      %cst = arith.constant 1.000000e+00 : bf16
      %37 = vector.broadcast %cst : bf16 to vector<8x1xbf16>
      %c0_16 = arith.constant 0 : index
      %c0_17 = arith.constant 0 : index
      %38 = vector.load %arg14[%c0_16, %c0_17] : memref<8x32xf32, #tpu.memory_space<vmem>>, vector<8x32xf32>
      %cst_18 = arith.constant dense<0.000000e+00> : vector<8x32xf32>
      %39 = tpu.matmul %11, %36, %cst_18 {dimension_numbers = #tpu.dot_dimension_numbers<[0], [0], [1], [1], [0, 1, 1, 1], [], []>} : vector<8x8xbf16>, vector<8x32xbf16>, vector<8x32xf32> -> vector<8x32xf32>
      %40 = arith.addf %38, %39 : vector<8x32xf32>
      %c0_19 = arith.constant 0 : index
      %c0_20 = arith.constant 0 : index
      %41 = vector.load %arg14[%c0_19, %c0_20] : memref<8x32xf32, #tpu.memory_space<vmem>>, vector<8x32xf32>
      tpu.vector_store %arg14[%c0_19, %c0_20], %40 {strides = array<i32>} : memref<8x32xf32, #tpu.memory_space<vmem>>, vector<8x32xf32>,
      %c0_21 = arith.constant 0 : index
      %c0_22 = arith.constant 0 : index
      %42 = vector.load %arg15[%c0_21, %c0_22] : memref<8x32xf32, #tpu.memory_space<vmem>>, vector<8x32xf32>
      %cst_23 = arith.constant dense<0.000000e+00> : vector<8x32xf32>
      %43 = tpu.matmul %18, %36, %cst_23 {dimension_numbers = #tpu.dot_dimension_numbers<[0], [0], [1], [1], [0, 1, 1, 1], [], []>} : vector<8x8xbf16>, vector<8x32xbf16>, vector<8x32xf32> -> vector<8x32xf32>
      %44 = arith.addf %42, %43 : vector<8x32xf32>
      %c0_24 = arith.constant 0 : index
      %c0_25 = arith.constant 0 : index
      %45 = vector.load %arg15[%c0_24, %c0_25] : memref<8x32xf32, #tpu.memory_space<vmem>>, vector<8x32xf32>
      tpu.vector_store %arg15[%c0_24, %c0_25], %44 {strides = array<i32>} : memref<8x32xf32, #tpu.memory_space<vmem>>, vector<8x32xf32>,
      %c0_26 = arith.constant 0 : index
      %c0_27 = arith.constant 0 : index
      %46 = vector.load %arg16[%c0_26, %c0_27] : memref<8x1xf32, #tpu.memory_space<vmem>>, vector<8x1xf32>
      %cst_28 = arith.constant dense<0.000000e+00> : vector<8x1xf32>
      %47 = tpu.matmul %11, %37, %cst_28 {dimension_numbers = #tpu.dot_dimension_numbers<[0], [0], [1], [1], [0, 1, 1, 1], [], []>} : vector<8x8xbf16>, vector<8x1xbf16>, vector<8x1xf32> -> vector<8x1xf32>
      %48 = arith.addf %46, %47 : vector<8x1xf32>
      %c0_29 = arith.constant 0 : index
      %c0_30 = arith.constant 0 : index
      %49 = vector.load %arg16[%c0_29, %c0_30] : memref<8x1xf32, #tpu.memory_space<vmem>>, vector<8x1xf32>
      tpu.vector_store %arg16[%c0_29, %c0_30], %48 {strides = array<i32>} : memref<8x1xf32, #tpu.memory_space<vmem>>, vector<8x1xf32>,
      %c0_31 = arith.constant 0 : index
      %c0_32 = arith.constant 0 : index
      %50 = vector.load %arg17[%c0_31, %c0_32] : memref<8x1xf32, #tpu.memory_space<vmem>>, vector<8x1xf32>
      %cst_33 = arith.constant dense<0.000000e+00> : vector<8x1xf32>
      %51 = tpu.matmul %18, %37, %cst_33 {dimension_numbers = #tpu.dot_dimension_numbers<[0], [0], [1], [1], [0, 1, 1, 1], [], []>} : vector<8x8xbf16>, vector<8x1xbf16>, vector<8x1xf32> -> vector<8x1xf32>
      %52 = arith.addf %50, %51 : vector<8x1xf32>
      %c0_34 = arith.constant 0 : index
      %c0_35 = arith.constant 0 : index
      %53 = vector.load %arg17[%c0_34, %c0_35] : memref<8x1xf32, #tpu.memory_space<vmem>>, vector<8x1xf32>
      tpu.vector_store %arg17[%c0_34, %c0_35], %52 {strides = array<i32>} : memref<8x1xf32, #tpu.memory_space<vmem>>, vector<8x1xf32>,
    } else {
    }
    %c1_i32 = arith.constant 1 : i32
    %22 = arith.cmpi eq, %arg0, %c1_i32 : i32
    %c0_i32_7 = arith.constant 0 : i32
    %23 = arith.cmpi eq, %arg1, %c0_i32_7 : i32
    %24 = arith.andi %22, %23 : i1
    %25 = arith.extui %24 : i1 to i32
    %c0_i32_8 = arith.constant 0 : i32
    %26 = arith.cmpi ne, %25, %c0_i32_8 : i32
    scf.if %26 {
      %c0_14 = arith.constant 0 : index
      %c0_15 = arith.constant 0 : index
      %35 = vector.load %arg14[%c0_14, %c0_15] : memref<8x32xf32, #tpu.memory_space<vmem>>, vector<8x32xf32>
      %c0_16 = arith.constant 0 : index
      %c0_17 = arith.constant 0 : index
      %36 = vector.load %arg16[%c0_16, %c0_17] : memref<8x1xf32, #tpu.memory_space<vmem>>, vector<8x1xf32>
      %cst = arith.constant 1.000000e+00 : f32
      %37 = vector.broadcast %cst : f32 to vector<8x1xf32>
      %38 = arith.maximumf %36, %37 : vector<8x1xf32>
      %cst_18 = arith.constant 1.000000e+00 : f32
      %39 = vector.broadcast %cst_18 : f32 to vector<8x1xf32>
      %40 = arith.divf %39, %38 : vector<8x1xf32>
      %41 = vector.extract_strided_slice %35 {offsets = [0, 0], sizes = [8, 16], strides = [1, 1]} : vector<8x32xf32> to vector<8x16xf32>
      %cst_19 = arith.constant 0.000000e+00 : f32
      %42 = vector.broadcast %cst_19 : f32 to vector<8x16xf32>
      %43 = arith.maximumf %41, %42 : vector<8x16xf32>
      %44 = vector.broadcast %40 : vector<8x1xf32> to vector<8x16xf32>
      %45 = arith.mulf %43, %44 : vector<8x16xf32>
      %46 = arith.truncf %45 : vector<8x16xf32> to vector<8x16xbf16>
      %c0_20 = arith.constant 0 : index
      %c0_21 = arith.constant 0 : index
      %47 = vector.load %arg7[%c0_20, %c0_21] : memref<16x32xbf16, #tpu.memory_space<vmem>>, vector<16x32xbf16>
      %cst_22 = arith.constant dense<0.000000e+00> : vector<8x32xf32>
      %48 = tpu.matmul %46, %47, %cst_22 {dimension_numbers = #tpu.dot_dimension_numbers<[1], [0], [0], [1], [0, 0, 1, 1], [], []>} : vector<8x16xbf16>, vector<16x32xbf16>, vector<8x32xf32> -> vector<8x32xf32>
      %49 = arith.truncf %48 : vector<8x32xf32> to vector<8x32xbf16>
      %c0_23 = arith.constant 0 : index
      %c0_24 = arith.constant 0 : index
      %50 = vector.load %arg11[%c0_23, %c0_24] : memref<8x32xbf16, #tpu.memory_space<vmem>>, vector<8x32xbf16>
      tpu.vector_store %arg11[%c0_23, %c0_24], %49 {strides = array<i32>} : memref<8x32xbf16, #tpu.memory_space<vmem>>, vector<8x32xbf16>,
      %c0_25 = arith.constant 0 : index
      %c0_26 = arith.constant 0 : index
      %51 = vector.load %arg15[%c0_25, %c0_26] : memref<8x32xf32, #tpu.memory_space<vmem>>, vector<8x32xf32>
      %c0_27 = arith.constant 0 : index
      %c0_28 = arith.constant 0 : index
      %52 = vector.load %arg17[%c0_27, %c0_28] : memref<8x1xf32, #tpu.memory_space<vmem>>, vector<8x1xf32>
      %cst_29 = arith.constant 1.000000e+00 : f32
      %53 = vector.broadcast %cst_29 : f32 to vector<8x1xf32>
      %54 = arith.maximumf %52, %53 : vector<8x1xf32>
      %cst_30 = arith.constant 1.000000e+00 : f32
      %55 = vector.broadcast %cst_30 : f32 to vector<8x1xf32>
      %56 = arith.divf %55, %54 : vector<8x1xf32>
      %57 = vector.extract_strided_slice %51 {offsets = [0, 16], sizes = [8, 16], strides = [1, 1]} : vector<8x32xf32> to vector<8x16xf32>
      %cst_31 = arith.constant 0.000000e+00 : f32
      %58 = vector.broadcast %cst_31 : f32 to vector<8x16xf32>
      %59 = arith.maximumf %57, %58 : vector<8x16xf32>
      %60 = vector.broadcast %56 : vector<8x1xf32> to vector<8x16xf32>
      %61 = arith.mulf %59, %60 : vector<8x16xf32>
      %62 = arith.truncf %61 : vector<8x16xf32> to vector<8x16xbf16>
      %c0_32 = arith.constant 0 : index
      %c0_33 = arith.constant 0 : index
      %63 = vector.load %arg8[%c0_32, %c0_33] : memref<16x32xbf16, #tpu.memory_space<vmem>>, vector<16x32xbf16>
      %cst_34 = arith.constant dense<0.000000e+00> : vector<8x32xf32>
      %64 = tpu.matmul %62, %63, %cst_34 {dimension_numbers = #tpu.dot_dimension_numbers<[1], [0], [0], [1], [0, 0, 1, 1], [], []>} : vector<8x16xbf16>, vector<16x32xbf16>, vector<8x32xf32> -> vector<8x32xf32>
      %65 = arith.truncf %64 : vector<8x32xf32> to vector<8x32xbf16>
      %c0_35 = arith.constant 0 : index
      %c0_36 = arith.constant 0 : index
      %66 = vector.load %arg12[%c0_35, %c0_36] : memref<8x32xbf16, #tpu.memory_space<vmem>>, vector<8x32xbf16>
      tpu.vector_store %arg12[%c0_35, %c0_36], %65 {strides = array<i32>} : memref<8x32xbf16, #tpu.memory_space<vmem>>, vector<8x32xbf16>,
    } else {
    }
    %c1_i32_9 = arith.constant 1 : i32
    %27 = arith.cmpi eq, %arg0, %c1_i32_9 : i32
    %28 = arith.extui %27 : i1 to i32
    %c0_i32_10 = arith.constant 0 : i32
    %29 = arith.cmpi ne, %28, %c0_i32_10 : i32
    scf.if %29 {
      %c0_14 = arith.constant 0 : index
      %c0_15 = arith.constant 0 : index
      %35 = vector.load %arg3[%c0_14, %c0_15] : memref<8x8xbf16, #tpu.memory_space<vmem>>, vector<8x8xbf16>
      %c0_16 = arith.constant 0 : index
      %c0_17 = arith.constant 0 : index
      %36 = vector.load %arg6[%c0_16, %c0_17] : memref<8x32xbf16, #tpu.memory_space<vmem>>, vector<8x32xbf16>
      %cst = arith.constant dense<0.000000e+00> : vector<8x32xf32>
      %37 = tpu.matmul %35, %36, %cst {dimension_numbers = #tpu.dot_dimension_numbers<[1], [0], [0], [1], [0, 0, 1, 1], [], []>} : vector<8x8xbf16>, vector<8x32xbf16>, vector<8x32xf32> -> vector<8x32xf32>
      %c0_18 = arith.constant 0 : index
      %c0_19 = arith.constant 0 : index
      %38 = vector.load %arg11[%c0_18, %c0_19] : memref<8x32xbf16, #tpu.memory_space<vmem>>, vector<8x32xbf16>
      %cst_20 = arith.constant dense<0.000000e+00> : vector<8x32xf32>
      %39 = tpu.matmul %11, %38, %cst_20 {dimension_numbers = #tpu.dot_dimension_numbers<[1], [0], [0], [1], [0, 0, 1, 1], [], []>} : vector<8x8xbf16>, vector<8x32xbf16>, vector<8x32xf32> -> vector<8x32xf32>
      %40 = arith.addf %37, %39 : vector<8x32xf32>
      %c0_21 = arith.constant 0 : index
      %c0_22 = arith.constant 0 : index
      %41 = vector.load %arg12[%c0_21, %c0_22] : memref<8x32xbf16, #tpu.memory_space<vmem>>, vector<8x32xbf16>
      %cst_23 = arith.constant dense<0.000000e+00> : vector<8x32xf32>
      %42 = tpu.matmul %18, %41, %cst_23 {dimension_numbers = #tpu.dot_dimension_numbers<[1], [0], [0], [1], [0, 0, 1, 1], [], []>} : vector<8x8xbf16>, vector<8x32xbf16>, vector<8x32xf32> -> vector<8x32xf32>
      %43 = arith.addf %40, %42 : vector<8x32xf32>
      %c0_24 = arith.constant 0 : index
      %c0_25 = arith.constant 0 : index
      %44 = vector.load %arg18[%c0_24, %c0_25] : memref<2x32xf32, #tpu.memory_space<vmem>>, vector<2x32xf32>
      %cst_26 = arith.constant dense<0.000000e+00> : vector<32xf32>
      %45 = vector.multi_reduction <add>, %43, %cst_26 [0] : vector<8x32xf32> to vector<32xf32>
      %46 = vector.shape_cast %45 : vector<32xf32> to vector<1x32xf32>
      %47 = arith.mulf %43, %43 : vector<8x32xf32>
      %cst_27 = arith.constant dense<0.000000e+00> : vector<32xf32>
      %48 = vector.multi_reduction <add>, %47, %cst_27 [0] : vector<8x32xf32> to vector<32xf32>
      %49 = vector.shape_cast %48 : vector<32xf32> to vector<1x32xf32>
      %50 = tpu.concatenate %46, %49 in 0 : vector<1x32xf32>, vector<1x32xf32> -> vector<2x32xf32>
      %51 = arith.addf %44, %50 : vector<2x32xf32>
      %c0_28 = arith.constant 0 : index
      %c0_29 = arith.constant 0 : index
      %52 = vector.load %arg18[%c0_28, %c0_29] : memref<2x32xf32, #tpu.memory_space<vmem>>, vector<2x32xf32>
      tpu.vector_store %arg18[%c0_28, %c0_29], %51 {strides = array<i32>} : memref<2x32xf32, #tpu.memory_space<vmem>>, vector<2x32xf32>,
    } else {
    }
    %c1_i32_11 = arith.constant 1 : i32
    %30 = arith.cmpi eq, %arg0, %c1_i32_11 : i32
    %c1_i32_12 = arith.constant 1 : i32
    %31 = arith.cmpi eq, %arg1, %c1_i32_12 : i32
    %32 = arith.andi %30, %31 : i1
    %33 = arith.extui %32 : i1 to i32
    %c0_i32_13 = arith.constant 0 : i32
    %34 = arith.cmpi ne, %33, %c0_i32_13 : i32
    scf.if %34 {
      %c0_14 = arith.constant 0 : index
      %c0_15 = arith.constant 0 : index
      %35 = vector.load %arg18[%c0_14, %c0_15] : memref<2x32xf32, #tpu.memory_space<vmem>>, vector<1x32xf32>
      %cst = arith.constant 6.250000e-02 : f32
      %36 = vector.broadcast %cst : f32 to vector<1x32xf32>
      %37 = arith.mulf %35, %36 : vector<1x32xf32>
      %c1 = arith.constant 1 : index
      %c0_16 = arith.constant 0 : index
      %38 = vector.load %arg18[%c1, %c0_16] : memref<2x32xf32, #tpu.memory_space<vmem>>, vector<1x32xf32>
      %cst_17 = arith.constant 6.250000e-02 : f32
      %39 = vector.broadcast %cst_17 : f32 to vector<1x32xf32>
      %40 = arith.mulf %38, %39 : vector<1x32xf32>
      %41 = arith.mulf %37, %37 : vector<1x32xf32>
      %42 = arith.subf %40, %41 : vector<1x32xf32>
      %cst_18 = arith.constant 0.000000e+00 : f32
      %43 = vector.broadcast %cst_18 : f32 to vector<1x32xf32>
      %44 = arith.maximumf %42, %43 : vector<1x32xf32>
      %c0_19 = arith.constant 0 : index
      %c0_20 = arith.constant 0 : index
      %45 = vector.load %arg9[%c0_19, %c0_20] : memref<1x32xf32, #tpu.memory_space<vmem>>, vector<1x32xf32>
      %cst_21 = arith.constant 9.99999974E-6 : f32
      %46 = vector.broadcast %cst_21 : f32 to vector<1x32xf32>
      %47 = arith.addf %44, %46 : vector<1x32xf32>
      %48 = math.rsqrt %47 : vector<1x32xf32>
      %49 = arith.mulf %45, %48 : vector<1x32xf32>
      %c0_22 = arith.constant 0 : index
      %c0_23 = arith.constant 0 : index
      %50 = vector.load %arg10[%c0_22, %c0_23] : memref<1x32xf32, #tpu.memory_space<vmem>>, vector<1x32xf32>
      %51 = arith.mulf %37, %49 : vector<1x32xf32>
      %52 = arith.subf %50, %51 : vector<1x32xf32>
      %53 = tpu.concatenate %49, %52 in 0 : vector<1x32xf32>, vector<1x32xf32> -> vector<2x32xf32>
      %c0_24 = arith.constant 0 : index
      %c0_25 = arith.constant 0 : index
      %54 = vector.load %arg13[%c0_24, %c0_25] : memref<2x32xf32, #tpu.memory_space<vmem>>, vector<2x32xf32>
      tpu.vector_store %arg13[%c0_24, %c0_25], %53 {strides = array<i32>} : memref<2x32xf32, #tpu.memory_space<vmem>>, vector<2x32xf32>,
    } else {
    }
    return
  }
  func.func @transform_0(%arg0: i32, %arg1: i32) -> (i32, i32) {
    %c1_i32 = arith.constant 1 : i32
    %0 = arith.subi %c1_i32, %arg0 : i32
    %1 = arith.muli %arg1, %0 : i32
    %c0_i32 = arith.constant 0 : i32
    %c0_i32_0 = arith.constant 0 : i32
    return %1, %c0_i32 : i32, i32
  }
  func.func @transform_1(%arg0: i32, %arg1: i32) -> (i32, i32) {
    %0 = arith.muli %arg1, %arg0 : i32
    %c0_i32 = arith.constant 0 : i32
    %c0_i32_0 = arith.constant 0 : i32
    return %0, %c0_i32 : i32, i32
  }
  func.func @transform_2(%arg0: i32, %arg1: i32) -> (i32, i32) {
    %c0_i32 = arith.constant 0 : i32
    %c0_i32_0 = arith.constant 0 : i32
    return %arg1, %c0_i32 : i32, i32
  }
  func.func @transform_3(%arg0: i32, %arg1: i32) -> (i32, i32) {
    %c0_i32 = arith.constant 0 : i32
    %c0_i32_0 = arith.constant 0 : i32
    return %arg1, %c0_i32 : i32, i32
  }
  func.func @transform_4(%arg0: i32, %arg1: i32) -> (i32, i32) {
    %c0_i32 = arith.constant 0 : i32
    %c0_i32_0 = arith.constant 0 : i32
    %c0_i32_1 = arith.constant 0 : i32
    return %c0_i32, %c0_i32_0 : i32, i32
  }
  func.func @transform_5(%arg0: i32, %arg1: i32) -> (i32, i32) {
    %c0_i32 = arith.constant 0 : i32
    %c0_i32_0 = arith.constant 0 : i32
    %c0_i32_1 = arith.constant 0 : i32
    return %c0_i32, %c0_i32_0 : i32, i32
  }
  func.func @transform_6(%arg0: i32, %arg1: i32) -> (i32, i32) {
    %c0_i32 = arith.constant 0 : i32
    %c0_i32_0 = arith.constant 0 : i32
    %c0_i32_1 = arith.constant 0 : i32
    return %c0_i32, %c0_i32_0 : i32, i32
  }
  func.func @transform_7(%arg0: i32, %arg1: i32) -> (i32, i32) {
    %c0_i32 = arith.constant 0 : i32
    %c0_i32_0 = arith.constant 0 : i32
    %c0_i32_1 = arith.constant 0 : i32
    return %c0_i32, %c0_i32_0 : i32, i32
  }
  func.func @transform_8(%arg0: i32, %arg1: i32) -> (i32, i32) {
    %c0_i32 = arith.constant 0 : i32
    %c0_i32_0 = arith.constant 0 : i32
    %c0_i32_1 = arith.constant 0 : i32
    return %c0_i32, %c0_i32_0 : i32, i32
  }
  func.func @transform_9(%arg0: i32, %arg1: i32) -> (i32, i32) {
    %c0_i32 = arith.constant 0 : i32
    %c0_i32_0 = arith.constant 0 : i32
    %c0_i32_1 = arith.constant 0 : i32
    return %c0_i32, %c0_i32_0 : i32, i32
  }
  func.func @transform_10(%arg0: i32, %arg1: i32) -> (i32, i32) {
    %c0_i32 = arith.constant 0 : i32
    %c0_i32_0 = arith.constant 0 : i32
    %c0_i32_1 = arith.constant 0 : i32
    return %c0_i32, %c0_i32_0 : i32, i32
  }
  func.func @transform_11(%arg0: i32, %arg1: i32) -> (i32, i32) {
    %c0_i32 = arith.constant 0 : i32
    %c0_i32_0 = arith.constant 0 : i32
    %c0_i32_1 = arith.constant 0 : i32
    return %c0_i32, %c0_i32_0 : i32, i32
  }
}

</mosaic_0001>

<bundles_post_ra>
// kernel: dist_layer.3
= control target key start
LH: loop header
LB: loop body
LE: loop exit
PB: predicated region body
PF: predicated region fallthrough
CT: control target
= control target key end

     0   :  { %s1783_s0 = inlined_call_operand.hbm [shape: f32[16,32], index: 0, kind: input, shape index: {}]   ;;  %s1784_s1 = inlined_call_operand.hbm [shape: bf16[16,8], index: 1, kind: input, shape index: {}]   ;;  %s1785_s2 = inlined_call_operand.hbm [shape: s32[16,1], index: 2, kind: input, shape index: {}]   ;;  %s1786_s3 = inlined_call_operand.hbm [shape: s32[16,1], index: 3, kind: input, shape index: {}]   ;;  %s1787_s4 = inlined_call_operand.hbm [shape: bf16[8,32], index: 4, kind: input, shape index: {}]   ;;  %s1788_s5 = inlined_call_operand.hbm [shape: bf16[8,32], index: 5, kind: input, shape index: {}]   ;;  %s1789_s6 = inlined_call_operand.hbm [shape: bf16[8,32], index: 6, kind: input, shape index: {}]   ;;  %s1790_s7 = inlined_call_operand.hbm [shape: f32[2,32], index: 7, kind: input, shape index: {}]   ;;  %s1791_s8 = inlined_call_operand.hbm [shape: f32[16,32], index: 8, kind: output, shape index: {}]  }
   0x1   :  { %1810 = sst [smem:[#allocation29_spill]] %s1783_s0 }
   0x2   :  { %1811 = sst [smem:[#allocation30_spill]] %s1784_s1 }
   0x3   :  { %1812 = sst [smem:[#allocation31_spill]] %s1787_s4 }
   0x4   :  { %1813 = sst [smem:[#allocation32_spill]] %s1788_s5 }
   0x5   :  { %13 = vsyncpa [#allocation3], 0 }
   0x6   :  { %15 = vsyncpa [#allocation3 + $0x1], 0 }
   0x7   :  { %16 = vsyncpa [#allocation6], 0 }
   0x8   :  { %18 = vsyncpa [#allocation6 + $0x1], 0 }
   0x9   :  { %19 = vsyncpa [#allocation9], 0 }
   0xa   :  { %21 = vsyncpa [#allocation9 + $0x1], 0 }
   0xb   :  { %22 = vsyncpa [#allocation12], 0 }
   0xc   :  { %23 = vsyncpa [#allocation15], 0 }
   0xd   :  { %24 = vsyncpa [#allocation4], 0 }
   0xe   :  { %26 = vsyncpa [#allocation4 + $0x1], 0  ;;  %s1396_s27 = smov 0   ;;  %s1398_s28 = smov 0  }
   0xf   :  { %s1400_s29 = smov 0   ;;  %s1402_s30 = smov 0  }
  0x10 LB: > { %1814 = sst [smem:[#allocation24_spill]] %s1325_s27  ;;  %s1339_s9 = smov [#allocation10]   ;;  %s1337_s30 = sphi %s1402_s30, %s1852_s30   ;;  %s1333_s29 = sphi %s1400_s29, %s1854_s29   ;;  %s1329_s28 = sphi %s1398_s28, %s1856_s28   ;;  %s1325_s27 = sphi %s1396_s27, %s1855_s27  }
  0x11   : > { %1815 = sst [smem:[#allocation25_spill]] %s1333_s29  ;;  %s264_s10 = sshll.u32 %s1339_s9, 4  ;;  %s265_s10 = int_to_ptr.vmem [resolvable:$true] %s264_s10 }
  0x12   : > { %s1417_s11 = sadd.s32 4294967295, %s1337_s30   ;;  %p849_p0 = scmp.ge.s32.totalorder %s1337_s30, 1 }
  0x13   : > { %p1792_p1 = scmp.eq.s32.totalorder %s1417_s11, 0  ;;  %p251_p2 = scmp.lt.s32.totalorder %s1337_s30, 3 }
  0x14   : > { %s1340_s13 = smov [#allocation11]   ;;  %s1818_s4 = sld [smem:[#allocation31_spill]] }
  0x15   : > { %p1422_p3 = pnand %p849_p0, %p251_p2  ;;  %s275_s14 = sshll.u32 %s1340_s13, 4  ;;  %s1429_s14 = int_to_ptr.vmem [resolvable:$true] %s275_s14 }
  0x17   : > { %s1816_s12 = scalar_select %p1422_p3, 1, 0 }
  0x18   : > { %p939_p5 = pneg %p1422_p3 }
  0x1a   : > { %p1433_p6 = pnand %p939_p5, %p1792_p1  ;;  %s1019_s18 = scalar_lea.hbm %s1818_s4, 64 }
  0x1b   : > { %p1020_p7 = scmp.ne.s32.totalorder %s1818_s4, %s1019_s18  ;;  %p1026_p11 = scmp.lt.u32.totalorder %s1019_s18, %s1818_s4 }
  0x1c   : > { %s1817_s15 = scalar_select %p1433_p6, 1, 0 }
  0x1d   : > { %p1445_p8 = pneg %p1433_p6 }
  0x1f   : > { %s1819_s21 = scalar_select %p1445_p8, 1, 0 }
  0x20   : > { %p1022_p9 = pnand %p1445_p8, %p1020_p7 }
  0x22   : > { %p1023_p10 = pneg %p1022_p9 }
  0x24   : > { %p1028_p12 = pnand %p1026_p11, %p1023_p10 }
  0x26   : > { %1031 = shalt.err (!%p1028_p12)
}
  0x27   : > { %s1032_s24 = scalar_lea.vmem %s265_s10, 64  ;;  %p1040_p5 = scmp.lt.s32.totalorder %s265_s10, %s265_s10 }
  0x28   : > { %p1033_p13 = scmp.ne.s32.totalorder %s265_s10, %s1032_s24  ;;  %p1041_p4 = scmp.lt.s32.totalorder %s1032_s24, %s1032_s24 }
  0x2a   : > { %p1035_p0 = pnand %p1033_p13, %p1445_p8  ;;  %p1042_p1 = por %p1041_p4, %p1040_p5 }
  0x2c   : > { %p1036_p2 = pneg %p1035_p0 }
  0x2e   : > { %p1043_p3 = pnand %p1042_p1, %p1036_p2 }
  0x30   : > { %1046 = shalt.err (!%p1043_p3)
}
  0x31   : > { %942 = dma.hbm_to_vmem [thread:$0]  (!%p1433_p6), %s1818_s4, 64, %s265_s10, [#allocation9]  }
  0x32   : > { %s1820_s5 = sld [smem:[#allocation32_spill]] }
  0x38   : > { %s1047_s16 = scalar_lea.hbm %s1820_s5, 64 }
  0x39   : > { %p1048_p7 = scmp.ne.s32.totalorder %s1820_s5, %s1047_s16  ;;  %p1054_p1 = scmp.lt.u32.totalorder %s1047_s16, %s1820_s5 }
  0x3b   : > { %p1050_p9 = pnand %p1048_p7, %p1445_p8 }
  0x3d   : > { %p1051_p4 = pneg %p1050_p9 }
  0x3f   : > { %p1056_p3 = pnand %p1054_p1, %p1051_p4 }
  0x41   : > { %1059 = shalt.err (!%p1056_p3)
}
  0x42   : > { %s1060_s10 = scalar_lea.vmem %s1429_s14, 64  ;;  %p1068_p13 = scmp.lt.s32.totalorder %s1429_s14, %s1429_s14 }
  0x43   : > { %p1061_p10 = scmp.ne.s32.totalorder %s1429_s14, %s1060_s10  ;;  %p1069_p0 = scmp.lt.s32.totalorder %s1060_s10, %s1060_s10 }
  0x45   : > { %p1063_p11 = pnand %p1061_p10, %p1445_p8  ;;  %p1070_p2 = por %p1069_p0, %p1068_p13 }
  0x47   : > { %p1064_p12 = pneg %p1063_p11 }
  0x49   : > { %p1071_p5 = pnand %p1070_p2, %p1064_p12 }
  0x4b   : > { %1074 = shalt.err (!%p1071_p5)
}
  0x4c   : > { %945 = dma.hbm_to_vmem [thread:$0]  (!%p1433_p6), %s1820_s5, 64, %s1429_s14, [#allocation12]  }
  0x4d   : > { %s848_s24 = sadd.s32 4294967294, %s1337_s30   ;;  %s1486_s25 = sadd.s32 1, %s1337_s30  }
  0x4e   : > { %1821 = sst [smem:[#allocation26_spill]] %s1486_s25  ;;  %s36_s26 = ssub.s32 %s1337_s30, %s1486_s25 }
  0x4f   : > { %s39_s9 = sadd.s32 1, %s1333_s29  ;;  %p37_p7 = scmp.eq.s32.totalorder %s36_s26, 0 }
  0x50   : > { %p46_p9 = scmp.ne.s32.totalorder %s1333_s29, %s1329_s28  ;;  %p47_p4 = scmp.eq.s32.totalorder %s1337_s30, 0 }
  0x51   : > { %p52_p1 = scmp.ne.s32.totalorder %s1329_s28, %s1325_s27  ;;  %p1823_p10 = scmp.eq.s32.totalorder %s1417_s11, 0 }
  0x52   : > { %s1497_s13 = scalar_select %p37_p7, %s1333_s29, %s39_s9  }
  0x53   : > { %p48_p3 = por %p47_p4, %p46_p9  ;;  %p1501_p11 = por %p1823_p10, %p52_p1 }
  0x54   : > { %1822 = sst [smem:[#allocation27_spill]] %s1497_s13  ;;  %p238_p12 = scmp.eq.s32.totalorder %s1417_s11, 1 }
  0x55   : > { %s1824_s16 = scalar_select %p1501_p11, 1, 0 }
  0x56   : > { %p244_p13 = scmp.eq.s32.totalorder %s848_s24, 1  ;;  %p973_p0 = scmp.lt.s32.totalorder %s1337_s30, 2 }
  0x57   : > { %s1508_s14 = sand.u32 1, %s1333_s29   ;;  %p1510_p2 = por %p238_p12, %p46_p9 }
  0x58   : > { %p1514_p5 = por %p244_p13, %p52_p1  ;;  %p1518_p7 = pnand %p973_p0, %p48_p3 }
  0x59   : > { %s1825_s17 = scalar_select %p1510_p2, 1, 0 }
  0x5a   : > { %s1826_s18 = scalar_select %p1514_p5, 1, 0 }
  0x5b   : > { %s1828_s19 = scalar_select %p1518_p7, 1, 0 }
  0x5c   : > { %1827 = sst [smem:[#allocation28_spill]] %s1826_s18  ;;  %s1796_s20 = sand.u32 1, %s1337_s30  }
  0x5d   : > { %s857_s10 = sshll.u32 %s1508_s14, 2  ;;  %s858_s22 = sshll.u32 %s1337_s30, 6 }
  0x5e   : > { %s330_s23 = scalar_lea.vmem [#allocation5], %s857_s10  ;;  %s1829_s1 = sld [smem:[#allocation30_spill]] }
  0x5f   : > { %s337_s24 = sshll.u32 %s330_s23, 4  ;;  %s1534_s5 = scalar_lea.sflag [#allocation6], %s1796_s20  ;;  %s1530_s24 = int_to_ptr.vmem [resolvable:$true] %s337_s24 }
  0x60   : > { %p1540_p4 = pneg %p1518_p7 }
  0x62   : > { %s1830_s10 = scalar_select %p1540_p4, 1, 0 }
  0x64   : > { %s1528_s4 = scalar_lea.hbm %s1829_s1, %s858_s22  ;;  %s1080_s26 = scalar_lea.hbm %s1829_s1, 128 }
  0x65   : > { %s1075_s13 = scalar_lea.hbm %s1528_s4, 64  ;;  %p1081_p10 = scmp.lt.u32.totalorder %s1528_s4, %s1829_s1 }
  0x66   : > { %p1076_p9 = scmp.ne.s32.totalorder %s1528_s4, %s1075_s13  ;;  %p1082_p12 = scmp.lt.u32.totalorder %s1080_s26, %s1075_s13 }
  0x67   : > { %p1084_p0 = scmp.lt.u32.totalorder %s1075_s13, %s1528_s4 }
  0x68   : > { %p1078_p1 = pnand %p1540_p4, %p1076_p9  ;;  %p1083_p13 = por %p1082_p12, %p1081_p10 }
  0x6a   : > { %p1079_p3 = pneg %p1078_p1  ;;  %p1085_p5 = por %p1084_p0, %p1083_p13 }
  0x6c   : > { %p1086_p2 = pnand %p1085_p5, %p1079_p3 }
  0x6e   : > { %1089 = shalt.err (!%p1086_p2)
}
  0x6f   : > { %s1090_s20 = scalar_lea.vmem %s1530_s24, 64  ;;  %s1341_s22 = smov [#allocation5]  }
  0x70   : > { %p1091_p9 = scmp.ne.s32.totalorder %s1530_s24, %s1090_s20  ;;  %s1095_s23 = sshll.u32 %s1341_s22, 4  ;;  %s1096_s23 = int_to_ptr.vmem [resolvable:$false] %s1095_s23 }
  0x71   : > { %s1097_s29 = scalar_lea.vmem %s1096_s23, 128  ;;  %p1098_p6 = scmp.lt.s32.totalorder %s1530_s24, %s1096_s23 }
  0x72   : > { %p1093_p1 = pnand %p1091_p9, %p1540_p4  ;;  %p1099_p8 = scmp.lt.s32.totalorder %s1097_s29, %s1090_s20 }
  0x74   : > { %p1094_p11 = pneg %p1093_p1  ;;  %p1100_p10 = por %p1099_p8, %p1098_p6 }
  0x76   : > { %p1101_p12 = pnand %p1100_p10, %p1094_p11 }
  0x78   : > { %1104 = shalt.err (!%p1101_p12)
}
  0x79   : > { %958 = dma.hbm_to_vmem [thread:$0]  (!%p1518_p7), %s1528_s4, 64, %s1530_s24, %s1534_s5  }
  0x7a   : > { %s1342_s13 = smov [#allocation13]   ;;  %s1343_s9 = smov [#allocation14]  }
  0x7b   : > { %s286_s26 = sshll.u32 %s1342_s13, 4  ;;  %s297_s1 = sshll.u32 %s1343_s9, 4  ;;  %s287_s26 = int_to_ptr.vmem [resolvable:$true] %s286_s26  ;;  %s298_s1 = int_to_ptr.vmem [resolvable:$true] %s297_s1 }
  0x7c   : > { %s1105_s23 = scalar_lea.hbm %s1789_s6, 64  ;;  %p1831_p8 = scmp.ne.s32.totalorder %s1819_s21, 0 }
  0x7d   : > { %p1106_p6 = scmp.ne.s32.totalorder %s1789_s6, %s1105_s23  ;;  %p1112_p5 = scmp.lt.u32.totalorder %s1105_s23, %s1789_s6 }
  0x7f   : > { %p1108_p11 = pnand %p1106_p6, %p1831_p8 }
  0x81   : > { %p1109_p2 = pneg %p1108_p11 }
  0x83   : > { %p1114_p3 = pnand %p1112_p5, %p1109_p2 }
  0x85   : > { %1117 = shalt.err (!%p1114_p3)
}
  0x86   : > { %s1118_s4 = scalar_lea.vmem %s287_s26, 64  ;;  %p1126_p1 = scmp.lt.s32.totalorder %s287_s26, %s287_s26 }
  0x87   : > { %p1119_p13 = scmp.ne.s32.totalorder %s287_s26, %s1118_s4  ;;  %p1127_p10 = scmp.lt.s32.totalorder %s1118_s4, %s1118_s4 }
  0x89   : > { %p1121_p0 = pnand %p1119_p13, %p1831_p8  ;;  %p1128_p12 = por %p1127_p10, %p1126_p1 }
  0x8b   : > { %p1122_p9 = pneg %p1121_p0 }
  0x8d   : > { %p1129_p7 = pnand %p1128_p12, %p1122_p9 }
  0x8f   : > { %1132 = shalt.err (!%p1129_p7)
}
  0x90   : > { %p1832_p6 = scmp.ne.s32.totalorder %s1817_s15, 0  ;;  %s1133_s13 = scalar_lea.hbm %s1790_s7, 32 }
  0x91   : > { %p1134_p11 = scmp.ne.s32.totalorder %s1790_s7, %s1133_s13  ;;  %p1140_p7 = scmp.lt.u32.totalorder %s1133_s13, %s1790_s7 }
  0x92   : > { %948 = dma.hbm_to_vmem [thread:$0]  (!%p1832_p6), %s1789_s6, 64, %s287_s26, [#allocation12]  }
  0x93   : > { %p1136_p2 = pnand %p1134_p11, %p1831_p8 }
  0x95   : > { %p1137_p5 = pneg %p1136_p2 }
  0x97   : > { %p1142_p3 = pnand %p1140_p7, %p1137_p5 }
  0x99   : > { %1145 = shalt.err (!%p1142_p3)
}
  0x9a   : > { %s1146_s29 = scalar_lea.vmem %s298_s1, 32  ;;  %p1154_p1 = scmp.lt.s32.totalorder %s298_s1, %s298_s1 }
  0x9b   : > { %p1147_p13 = scmp.ne.s32.totalorder %s298_s1, %s1146_s29  ;;  %p1155_p10 = scmp.lt.s32.totalorder %s1146_s29, %s1146_s29 }
  0x9d   : > { %p1149_p0 = pnand %p1147_p13, %p1831_p8  ;;  %p1156_p12 = por %p1155_p10, %p1154_p1 }
  0x9f   : > { %p1150_p9 = pneg %p1149_p0 }
  0xa1   : > { %p1157_p4 = pnand %p1156_p12, %p1150_p9 }
  0xa3   : > { %1160 = shalt.err (!%p1157_p4)
}
  0xa4   : > { %951 = dma.hbm_to_vmem [thread:$0]  (!%p1832_p6), %s1790_s7, 32, %s298_s1, [#allocation15]  }
  0xa5   : > { %s1601_s25 = sshll.u32 %s1508_s14, 3  ;;  %s1604_s21 = sshll.u32 %s1337_s30, 7 }
  0xa6   : > { %s1833_s0 = sld [smem:[#allocation29_spill]]  ;;  %s312_s15 = scalar_lea.vmem [#allocation2], %s1601_s25 }
  0xa7   : > { %s319_s13 = sshll.u32 %s312_s15, 4  ;;  %s1619_s22 = scalar_lea.hbm %s1785_s2, %s1604_s21  ;;  %s1613_s13 = int_to_ptr.vmem [resolvable:$true] %s319_s13 }
  0xa8   : > { %s309_s23 = scalar_lea.sflag [#allocation3], %s1508_s14  ;;  %p1834_p8 = scmp.ne.s32.totalorder %s1830_s10, 0 }
  0xac   : > { %s1610_s18 = scalar_lea.hbm %s1833_s0, %s1604_s21  ;;  %s1166_s4 = scalar_lea.hbm %s1833_s0, 256 }
  0xad   : > { %s1161_s20 = scalar_lea.hbm %s1610_s18, 128  ;;  %p1167_p2 = scmp.lt.u32.totalorder %s1610_s18, %s1833_s0 }
  0xae   : > { %p1162_p4 = scmp.ne.s32.totalorder %s1610_s18, %s1161_s20  ;;  %p1168_p5 = scmp.lt.u32.totalorder %s1166_s4, %s1161_s20 }
  0xaf   : > { %p1170_p3 = scmp.lt.u32.totalorder %s1161_s20, %s1610_s18 }
  0xb0   : > { %p1164_p6 = pnand %p1162_p4, %p1834_p8  ;;  %p1169_p7 = por %p1168_p5, %p1167_p2 }
  0xb2   : > { %p1165_p11 = pneg %p1164_p6  ;;  %p1171_p13 = por %p1170_p3, %p1169_p7 }
  0xb4   : > { %p1172_p0 = pnand %p1171_p13, %p1165_p11 }
  0xb6   : > { %1175 = shalt.err (!%p1172_p0)
}
  0xb7   : > { %s1176_s14 = scalar_lea.vmem %s1613_s13, 128  ;;  %s1344_s15 = smov [#allocation2]  }
  0xb8   : > { %p1177_p9 = scmp.ne.s32.totalorder %s1613_s13, %s1176_s14  ;;  %s1181_s1 = sshll.u32 %s1344_s15, 4  ;;  %s1182_s1 = int_to_ptr.vmem [resolvable:$false] %s1181_s1 }
  0xb9   : > { %s1183_s9 = scalar_lea.vmem %s1182_s1, 256  ;;  %p1184_p12 = scmp.lt.s32.totalorder %s1613_s13, %s1182_s1 }
  0xba   : > { %p1179_p1 = pnand %p1177_p9, %p1834_p8  ;;  %p1185_p4 = scmp.lt.s32.totalorder %s1183_s9, %s1176_s14 }
  0xbc   : > { %p1180_p10 = pneg %p1179_p1  ;;  %p1186_p6 = por %p1185_p4, %p1184_p12 }
  0xbe   : > { %p1187_p2 = pnand %p1186_p6, %p1180_p10 }
  0xc0   : > { %1190 = shalt.err (!%p1187_p2)
}
  0xc1   : > { %p1835_p11 = scmp.ne.s32.totalorder %s1828_s19, 0  ;;  %s348_s20 = scalar_lea.vmem [#allocation7], %s1601_s25 }
  0xc2   : > { %s355_s29 = sshll.u32 %s348_s20, 4  ;;  %s1648_s24 = scalar_lea.hbm %s1786_s3, %s1604_s21  ;;  %s356_s29 = int_to_ptr.vmem [resolvable:$true] %s355_s29 }
  0xc3   : > { %955 = dma.hbm_to_vmem [thread:$0]  (!%p1835_p11), %s1610_s18, 128, %s1613_s13, %s309_s23  }
  0xc4   : > { %s1191_s27 = scalar_lea.hbm %s1619_s22, 128  ;;  %s1196_s1 = scalar_lea.hbm %s1785_s2, 256 }
  0xc5   : > { %p1192_p5 = scmp.ne.s32.totalorder %s1619_s22, %s1191_s27  ;;  %p1197_p13 = scmp.lt.u32.totalorder %s1619_s22, %s1785_s2 }
  0xc6   : > { %p1198_p0 = scmp.lt.u32.totalorder %s1196_s1, %s1191_s27  ;;  %p1200_p1 = scmp.lt.u32.totalorder %s1191_s27, %s1619_s22 }
  0xc7   : > { %p1194_p7 = pnand %p1192_p5, %p1834_p8 }
  0xc8   : > { %p1199_p9 = por %p1198_p0, %p1197_p13 }
  0xc9   : > { %p1195_p3 = pneg %p1194_p7 }
  0xca   : > { %p1201_p10 = por %p1200_p1, %p1199_p9 }
  0xcc   : > { %p1202_p12 = pnand %p1201_p10, %p1195_p3 }
  0xce   : > { %1205 = shalt.err (!%p1202_p12)
}
  0xcf   : > { %s1206_s21 = scalar_lea.vmem %s356_s29, 128  ;;  %s1345_s18 = smov [#allocation7]  }
  0xd0   : > { %p1207_p4 = scmp.ne.s32.totalorder %s356_s29, %s1206_s21  ;;  %s1211_s13 = sshll.u32 %s1345_s18, 4  ;;  %s1212_s13 = int_to_ptr.vmem [resolvable:$false] %s1211_s13 }
  0xd1   : > { %s1213_s23 = scalar_lea.vmem %s1212_s13, 256  ;;  %p1214_p5 = scmp.lt.s32.totalorder %s356_s29, %s1212_s13 }
  0xd2   : > { %p1209_p6 = pnand %p1207_p4, %p1834_p8  ;;  %p1215_p7 = scmp.lt.s32.totalorder %s1213_s23, %s1206_s21 }
  0xd4   : > { %p1210_p2 = pneg %p1209_p6  ;;  %p1216_p11 = por %p1215_p7, %p1214_p5 }
  0xd6   : > { %p1217_p0 = pnand %p1216_p11, %p1210_p2 }
  0xd8   : > { %1220 = shalt.err (!%p1217_p0)
}
  0xd9   : > { %p1836_p13 = scmp.ne.s32.totalorder %s1828_s19, 0  ;;  %s366_s0 = scalar_lea.vmem [#allocation8], %s1601_s25 }
  0xda   : > { %s373_s20 = sshll.u32 %s366_s0, 4  ;;  %s1837_s26 = sand.u32 1, %s1337_s30   ;;  %s374_s20 = int_to_ptr.vmem [resolvable:$true] %s373_s20 }
  0xdb   : > { %961 = dma.hbm_to_vmem [thread:$0]  (!%p1836_p13), %s1619_s22, 128, %s356_s29, %s1534_s5  }
  0xdc   : > { %s363_s4 = scalar_lea.sflag [#allocation9], %s1837_s26  ;;  %s1221_s27 = scalar_lea.hbm %s1648_s24, 128 }
  0xdd   : > { %p1222_p11 = scmp.ne.s32.totalorder %s1648_s24, %s1221_s27  ;;  %s1226_s1 = scalar_lea.hbm %s1786_s3, 256 }
  0xde   : > { %p1227_p1 = scmp.lt.u32.totalorder %s1648_s24, %s1786_s3  ;;  %p1228_p10 = scmp.lt.u32.totalorder %s1226_s1, %s1221_s27 }
  0xdf   : > { %p1224_p3 = pnand %p1222_p11, %p1834_p8  ;;  %p1230_p4 = scmp.lt.u32.totalorder %s1221_s27, %s1648_s24 }
  0xe0   : > { %p1229_p12 = por %p1228_p10, %p1227_p1 }
  0xe1   : > { %p1225_p9 = pneg %p1224_p3 }
  0xe2   : > { %p1231_p6 = por %p1230_p4, %p1229_p12 }
  0xe4   : > { %p1232_p2 = pnand %p1231_p6, %p1225_p9 }
  0xe6   : > { %1235 = shalt.err (!%p1232_p2)
}
  0xe7   : > { %s1236_s5 = scalar_lea.vmem %s374_s20, 128  ;;  %s1346_s25 = smov [#allocation8]  }
  0xe8   : > { %p1237_p5 = scmp.ne.s32.totalorder %s374_s20, %s1236_s5  ;;  %s1241_s22 = sshll.u32 %s1346_s25, 4  ;;  %s1242_s22 = int_to_ptr.vmem [resolvable:$false] %s1241_s22 }
  0xe9   : > { %s1243_s29 = scalar_lea.vmem %s1242_s22, 256  ;;  %p1244_p11 = scmp.lt.s32.totalorder %s374_s20, %s1242_s22 }
  0xea   : > { %p1239_p7 = pnand %p1237_p5, %p1834_p8  ;;  %p1245_p3 = scmp.lt.s32.totalorder %s1243_s29, %s1236_s5 }
  0xec   : > { %p1240_p0 = pneg %p1239_p7  ;;  %p1246_p13 = por %p1245_p3, %p1244_p11 }
  0xee   : > { %p1247_p1 = pnand %p1246_p13, %p1240_p0 }
  0xf0   : > { %1250 = shalt.err (!%p1247_p1)
}
  0xf1   : > { %p1838_p10 = scmp.ne.s32.totalorder %s1828_s19, 0  ;;  %p1839_p9 = scmp.ne.s32.totalorder %s1816_s12, 0 }
  0xf2   : > { %s1691_s10 = sand.u32 (!%p1839_p9), 1, %s1329_s28   ;;  %p1840_p8 = scmp.ne.s32.totalorder (!%p1839_p9), %s1824_s16, 0 }
  0xf3   : > { %964 = dma.hbm_to_vmem [thread:$0]  (!%p1838_p10), %s1648_s24, 128, %s374_s20, %s363_s4  }
  0xf4   : > { %382 = sbr.rel (%p1839_p9) target bundleno = 643 (0x283), region = 52  ;;  %s1694_s18 = sshll.u32 (!%p1839_p9), %s1691_s10, 3 }
  0xf5   : > { %s385_s13 = scalar_lea.sflag (!%p1839_p9), [#allocation3], %s1691_s10  ;;  %s388_s23 = scalar_lea.vmem (!%p1839_p9), [#allocation2], %s1694_s18 }
  0xfb   : > { %1296 = dma.done.wait (%p1840_p8), %s385_s13, 128  }
  0xfc   : > { %1298 = vsyncadd (%p1840_p8), %s385_s13, 4294967168  ;;  %s393_s12 = sand.u32 1, %s1417_s11   ;;  %s865_s19 = sshll.u32 %s1691_s10, 2 }
  0xfd   : > { %s394_s24 = scalar_lea.sflag [#allocation6], %s393_s12  ;;  %s397_s0 = scalar_lea.vmem [#allocation5], %s865_s19 }
  0xfe   : > { %1300 = dma.done.wait (%p1840_p8), %s394_s24, 192  }
  0xff   : > { %1302 = vsyncadd (%p1840_p8), %s394_s24, 4294967104  ;;  %s406_s20 = scalar_lea.vmem [#allocation7], %s1694_s18  ;;  %s412_s26 = scalar_lea.sflag [#allocation9], %s393_s12 }
 0x100   : > { %s415_s4 = scalar_lea.vmem [#allocation8], %s1694_s18 }
 0x101   : > { %1304 = dma.done.wait (%p1840_p8), %s412_s26, 128  }
 0x102   : > { %1306 = vsyncadd (%p1840_p8), %s412_s26, 4294967168  ;;  %p1841_p13 = scmp.eq.s32.totalorder %s1417_s11, 0 }
 0x104   : > { %1308 = dma.done.wait (%p1841_p13), [#allocation9], 64   ;;  %p1842_p12 = pmov %p1841_p13 }
 0x106   : > { %1310 = vsyncadd (%p1842_p12), [#allocation9], 4294967232  ;;  %p1843_p4 = pmov %p1842_p12 }
 0x108   : > { %1312 = dma.done.wait (%p1843_p4), [#allocation12], 128   ;;  %p1844_p6 = pmov %p1843_p4 }
 0x109   : > { %p1845_p2 = pmov %p1843_p4 }
 0x10a   : > { %1314 = vsyncadd (%p1844_p6), [#allocation12], 4294967168 }
 0x10b   : > { %1316 = dma.done.wait (%p1845_p2), [#allocation15], 32   ;;  %p1846_p5 = pmov %p1845_p2 }
 0x10c   : > { %v1347_v0 = vmov 0   ;;  %v1348_v1 = vmov 0.0   ;;  %vm1349_vm0 = vmmov 0   ;;  %vm505_vm1 = vcmask 1043456   ;;  %v480_v2 = vld [vmem:[%s406_s20] sm:$0xff]  ;;  %v490_v6 = vld [vmem:[%s415_s4] sm:$0xff] }
 0x10d   : > { %1318 = vsyncadd (%p1846_p5), [#allocation15], 4294967264  ;;  %1018 = vset.pattern.permute.xlu0 %v1347_v0  ;;  %896 = vmatprep.subr.bf16.mxu0 %v1348_v1  ;;  %v499_v3 = vld [vmem:[#allocation10] sm:$0xf]  ;;  %v595_v5 = vld [vmem:[#allocation13] sm:$0xf]  ;;  %v481_v11 = vlaneseq }
 0x10e   : > { %898 = vmatprep.mubr.msk.bf16.mxu0 %vm1349_vm0, %v1348_v1  ;;  %890 = vmatprep.subr.bf16.mxu1 %v1348_v1  ;;  %v553_v4 = vsel %vm505_vm1, %v499_v3, 0  ;;  %v498_v7 = vld [vmem:[%s397_s0] sm:$0xf]  ;;  %vm501_vm2 = vcmask 64512   ;;  %v500_v8 = vld [vmem:[#allocation11] sm:$0xf] }
 0x10f   : > { %892 = vmatprep.mubr.msk.bf16.mxu1 %vm1349_vm0, %v1348_v1  ;;  %484 = vperm.xlu0 %1018, %v480_v2   ;;  %v600_v9 = vsel %vm505_vm1, %v595_v5, 0  ;;  %v507_v10 = vsel %vm505_vm1, %v500_v8, 0  ;;  %v482_v12 = vand.u32 127, %v481_v11  ;;  %v878_v24 = vld [vmem:[#allocation14] ss:$0 sm:$0xff]  ;;  %s881_s16 = sshll.u32 %s1417_s11, 7 }
 0x110   : > { %897 = vmatpush3.bf16.msra.mxu0 %v553_v4  ;;  %891 = vmatpush3.bf16.msra.mxu1 %v507_v10  ;;  %v879_v27 = vld [vmem:[#allocation14 + $0x1] ss:$0 sm:$0xff]  ;;  %s478_s27 = scalar_lea.vmem [#allocation16], %s1694_s18  ;;  %vm658_vm5 = vcmask 261120   ;;  %s1739_s9 = scalar_lea.hbm %s1791_s8, %s881_s16 }
 0x111   : > { %902 = vmatprep.subr.bf16.mxu0 %v1348_v1  ;;  %v655_v31 = vld [vmem:[%s388_s23] sm:$0xff]  ;;  %s674_s14 = sshll.u32 %s478_s27, 4  ;;  %s661_s21 = scalar_lea.sflag [#allocation4], %s1691_s10  ;;  %s1741_s14 = int_to_ptr.vmem [resolvable:$true] %s674_s14 }
 0x112   : > { %s1251_s5 = scalar_lea.vmem %s1741_s14, 128  ;;  %p1847_p0 = scmp.ne.s32.totalorder %s1825_s17, 0 }
 0x113   : > { %492 = vperm.xlu0 %1018, %v490_v6   ;;  %899 = vmatmul.mubr.msk.bf16.vlgmr.msra.gmra.mrb[0].mxu0 %vm501_vm2, %v498_v7  ;;  %p1252_p7 = scmp.ne.s32.totalorder %s1741_s14, %s1251_s5  ;;  %s1350_s11 = smov [#allocation16]  }
 0x114   : > { %903 = vmatpush3.bf16.msra.mxu0 %v600_v9  ;;  %904 = vmatprep.mubr.msk.bf16.mxu0 %vm1349_vm0, %v1348_v1  ;;  %s1255_s25 = sshll.u32 %s1350_s11, 4  ;;  %s1256_s25 = int_to_ptr.vmem [resolvable:$false] %s1255_s25 }
 0x115   : > { %p1253_p11 = pnand %p1252_p7, %p1847_p0  ;;  %s1257_s22 = scalar_lea.vmem %s1256_s25, 256 }
 0x116   : > { %p1258_p1 = scmp.lt.s32.totalorder %s1741_s14, %s1256_s25  ;;  %p1259_p10 = scmp.lt.s32.totalorder %s1257_s22, %s1251_s5 }
 0x117   : > { %p1254_p3 = pneg %p1253_p11 }
 0x118   : > { %p1260_p9 = por %p1259_p10, %p1258_p1 }
 0x11a   : > { %p1261_p8 = pnand %p1260_p9, %p1254_p3 }
 0x18e   : > { %v485_v13 = vpop.permute.xlu0 %484 }
 0x18f   : > { %vm486_vm3 = vcmp.eq.s32.totalorder %v482_v12, %v485_v13 }
 0x190   : > { %v873_v14 = vsel %vm486_vm3, 1.0, %v1348_v1 }
 0x191   : > { %v489_v15 = vpack.c.bf16 %v873_v14, %v873_v14 }
 0x192   : > { %v493_v16 = vpop.permute.xlu0 %492 }
 0x193   : > { %vm494_vm4 = vcmp.eq.s32.totalorder %v482_v12, %v493_v16  ;;  %893 = vmatmul.mubr.msk.bf16.vlgmr.msra.gmra.mrb[0].mxu1 %vm501_vm2, %v489_v15 }
 0x194   : > { %v874_v17 = vsel %vm494_vm4, 1.0, %v1348_v1 }
 0x195   : > { %v497_v18 = vpack.c.bf16 %v874_v17, %v874_v17 }
 0x197   : > { %905 = vmatmul.mubr.msk.bf16.vlgmr.msra.gmra.mrb[0].mxu0 %vm501_vm2, %v497_v18 }
 0x266   : > { %v543_v19 = vpop.f32.mrb[0].mxu1 }
 0x267   : > { %v894_v20 = vpop.f32.mrb[1].mxu1 }
 0x268   : > { %v546_v21 = vpop.f32.mrb[2].mxu1 }
 0x269   : > { %v895_v22 = vpop.f32.mrb[3].mxu1 }
 0x26a   : > { %v636_v23 = vpop.f32.mrb[0].mxu0 }
 0x26b   : > { %v908_v25 = vadd.f32 %v636_v23, %v543_v19  ;;  %v906_v26 = vpop.f32.mrb[1].mxu0 }
 0x26c   : > { %v639_v28 = vpop.f32.mrb[2].mxu0 }
 0x26d   : > { %v649_v29 = vmul.f32 %v908_v25, %v878_v24  ;;  %v907_v30 = vpop.f32.mrb[3].mxu0 }
 0x26f   : > { %v654_v32 = vadd.f32 %v879_v27, %v649_v29 }
 0x271   : > { %v656_v33 = vadd.f32 %v655_v31, %v654_v32 }
 0x273   : > { %v657_v34 = vmax.f32 %v656_v33, 0.0 }
 0x275   : > { %659 = vst.msk [vmem:[%s478_s27] sm:$0xff] %vm658_vm5, %v657_v34 }
 0x276   : > { %1264 = shalt.err (!%p1261_p8)
}
 0x277   : > { %s1265_s29 = scalar_lea.hbm %s1739_s9, 128  ;;  %s1269_s13 = scalar_lea.hbm %s1791_s8, 256 }
 0x278   : > { %p1266_p13 = scmp.ne.s32.totalorder %s1739_s9, %s1265_s29  ;;  %p1270_p6 = scmp.lt.u32.totalorder %s1739_s9, %s1791_s8 }
 0x279   : > { %p1271_p2 = scmp.lt.u32.totalorder %s1269_s13, %s1265_s29  ;;  %p1273_p7 = scmp.lt.u32.totalorder %s1265_s29, %s1739_s9 }
 0x27a   : > { %p1267_p12 = pnand %p1266_p13, %p1847_p0 }
 0x27b   : > { %p1272_p5 = por %p1271_p2, %p1270_p6 }
 0x27c   : > { %p1268_p4 = pneg %p1267_p12 }
 0x27d   : > { %p1274_p11 = por %p1273_p7, %p1272_p5 }
 0x27f   : > { %p1275_p3 = pnand %p1274_p11, %p1268_p4 }
 0x281   : > { %1278 = shalt.err (!%p1275_p3)
}
 0x282   : > { %937 = dma.vmem_to_hbm [thread:$0]  (%p1847_p0), %s1741_s14, 128, %s1739_s9, %s661_s21  }
 0x283 PF: > { %s1848_s19 = sld [smem:[#allocation24_spill]]  ;;  %s1849_s24 = sld [smem:[#allocation28_spill]] }
 0x284   : > { %p1851_p10 = scmp.ge.s32.totalorder %s1337_s30, 2 }
 0x289   : > { %s686_s0 = sand.u32 1, %s1848_s19   ;;  %p1850_p1 = scmp.ne.s32.totalorder %s1849_s24, 0 }
 0x28a   : > { %s687_s20 = scalar_lea.sflag [#allocation4], %s686_s0 }
 0x28b   : > { %p966_p9 = pnand %p1851_p10, %p1850_p1 }
 0x28d   : > { %1320 = dma.done.wait (!%p966_p9), %s687_s20, 128  }
 0x28e   : > { %1322 = vsyncadd (!%p966_p9), %s687_s20, 4294967168  ;;  %s1852_s30 = sld [smem:[#allocation26_spill]]  ;;  %s1853_s26 = sld [smem:[#allocation25_spill]] }
 0x28f   : > { %s1854_s29 = sld [smem:[#allocation27_spill]]  ;;  %s1855_s27 = smov %s1329_s28 }
 0x294   : > { %p29_p8 = scmp.ge.s32.totalorder %s1852_s30, 4   ;;  %s1856_s28 = smov %s1853_s26 }
 0x296   :  { %31 = sbr.rel (!%p29_p8) target bundleno = 16 (0x10), region = 150 }
 0x29d   :  { %692 = vsyncpa [#allocation3], 1 }
 0x29e   :  { %694 = vsyncpa [#allocation3 + $0x1], 1 }
 0x29f   :  { %695 = vsyncpa [#allocation6], 1 }
 0x2a0   :  { %697 = vsyncpa [#allocation6 + $0x1], 1 }
 0x2a1   :  { %698 = vsyncpa [#allocation9], 1 }
 0x2a2   :  { %700 = vsyncpa [#allocation9 + $0x1], 1 }
 0x2a3   :  { %701 = vsyncpa [#allocation12], 1 }
 0x2a4   :  { %702 = vsyncpa [#allocation15], 1 }
 0x2a5   :  { %703 = vsyncpa [#allocation4], 1 }
 0x2a6   :  { %705 = vsyncpa [#allocation4 + $0x1], 1 }

// kernel: dist_layer.2
= control target key start
LH: loop header
LB: loop body
LE: loop exit
PB: predicated region body
PF: predicated region fallthrough
CT: control target
= control target key end

     0   :  { %s2961_s0 = inlined_call_operand.hbm [shape: f32[16,32], index: 0, kind: input, shape index: {}]   ;;  %s2962_s1 = inlined_call_operand.hbm [shape: bf16[16,8], index: 1, kind: input, shape index: {}]   ;;  %s2963_s2 = inlined_call_operand.hbm [shape: s32[16,1], index: 2, kind: input, shape index: {}]   ;;  %s2964_s3 = inlined_call_operand.hbm [shape: s32[16,1], index: 3, kind: input, shape index: {}]   ;;  %s2965_s4 = inlined_call_operand.hbm [shape: bf16[8,32], index: 4, kind: input, shape index: {}]   ;;  %s2966_s5 = inlined_call_operand.hbm [shape: bf16[16,32], index: 5, kind: input, shape index: {}]   ;;  %s2967_s6 = inlined_call_operand.hbm [shape: bf16[16,32], index: 6, kind: input, shape index: {}]   ;;  %s2968_s7 = inlined_call_operand.hbm [shape: f32[1,32], index: 7, kind: input, shape index: {}]   ;;  %s2969_s8 = inlined_call_operand.hbm [shape: f32[1,32], index: 8, kind: input, shape index: {}]   ;;  %s2970_s9 = inlined_call_operand.hbm [shape: bf16[8,32], index: 9, kind: output, shape index: {0}]   ;;  %s2971_s10 = inlined_call_operand.hbm [shape: bf16[8,32], index: 10, kind: output, shape index: {1}]   ;;  %s2972_s11 = inlined_call_operand.hbm [shape: f32[2,32], index: 11, kind: output, shape index: {2}]  }
   0x1   :  { %3001 = sst [smem:[#allocation43_spill]] %s2961_s0 }
   0x2   :  { %3002 = sst [smem:[#allocation44_spill]] %s2962_s1 }
   0x3   :  { %3003 = sst [smem:[#allocation45_spill]] %s2963_s2 }
   0x4   :  { %3004 = sst [smem:[#allocation46_spill]] %s2964_s3 }
   0x5   :  { %3005 = sst [smem:[#allocation47_spill]] %s2965_s4 }
   0x6   :  { %3006 = sst [smem:[#allocation48_spill]] %s2966_s5 }
   0x7   :  { %3007 = sst [smem:[#allocation49_spill]] %s2967_s6 }
   0x8   :  { %3008 = sst [smem:[#allocation50_spill]] %s2968_s7 }
   0x9   :  { %3009 = sst [smem:[#allocation51_spill]] %s2969_s8 }
   0xa   :  { %3010 = sst [smem:[#allocation52_spill]] %s2970_s9 }
   0xb   :  { %3011 = sst [smem:[#allocation53_spill]] %s2971_s10 }
   0xc   :  { %3012 = sst [smem:[#allocation54_spill]] %s2972_s11 }
   0xd   :  { %17 = vsyncpa [#allocation8], 0 }
   0xe   :  { %19 = vsyncpa [#allocation8 + $0x1], 0 }
   0xf   :  { %20 = vsyncpa [#allocation11], 0 }
  0x10   :  { %22 = vsyncpa [#allocation11 + $0x1], 0 }
  0x11   :  { %23 = vsyncpa [#allocation14], 0 }
  0x12   :  { %25 = vsyncpa [#allocation14 + $0x1], 0 }
  0x13   :  { %26 = vsyncpa [#allocation17], 0 }
  0x14   :  { %27 = vsyncpa [#allocation20], 0 }
  0x15   :  { %28 = vsyncpa [#allocation9], 0 }
  0x16   :  { %29 = vsyncpa [#allocation24], 0  ;;  %s2337_s17 = smov 0   ;;  %s2339_s18 = smov 0  }
  0x17   :  { %s2341_s19 = smov 0   ;;  %s2343_s20 = smov 0  }
  0x18   :  { %s2345_s21 = smov 0   ;;  %s2347_s22 = smov 0  }
  0x19   :  { %s2349_s23 = smov 0   ;;  %s2351_s24 = smov 0  }
  0x1a   :  { %s2353_s25 = smov 0   ;;  %s2355_s26 = smov 0  }
  0x1b   :  { %s2357_s27 = smov 0   ;;  %s2359_s28 = smov 0  }
  0x1c   :  { %s2361_s29 = smov 0   ;;  %s2363_s30 = smov 0  }
  0x1d LB: > { %3013 = sst [smem:[#allocation35_spill]] %s2197_s17  ;;  %s2408_s12 = sadd.s32 4294967295, %s2249_s30   ;;  %s2249_s30 = sphi %s2363_s30, %s35_s30   ;;  %s2245_s29 = sphi %s2361_s29, %s3099_s29   ;;  %s2241_s28 = sphi %s2359_s28, %s3098_s28   ;;  %s2237_s27 = sphi %s2357_s27, %s3097_s27   ;;  %s2233_s26 = sphi %s2355_s26, %s3096_s26   ;;  %s2229_s25 = sphi %s2353_s25, %s3095_s25   ;;  %s2225_s24 = sphi %s2351_s24, %s3094_s24   ;;  %s2221_s23 = sphi %s2349_s23, %s3093_s23   ;;  %s2217_s22 = sphi %s2347_s22, %s3092_s22   ;;  %s2213_s21 = sphi %s2345_s21, %s3091_s21   ;;  %s2209_s20 = sphi %s2343_s20, %s3089_s20   ;;  %s2205_s19 = sphi %s2341_s19, %s3090_s19   ;;  %s2201_s18 = sphi %s2339_s18, %s3088_s18   ;;  %s2197_s17 = sphi %s2337_s17, %s3087_s17  }
  0x1e   : > { %3014 = sst [smem:[#allocation36_spill]] %s2201_s18  ;;  %p1410_p0 = scmp.ge.s32.totalorder %s2249_s30, 1 }
  0x1f   : > { %3015 = sst [smem:[#allocation37_spill]] %s2205_s19  ;;  %p2981_p1 = scmp.eq.s32.totalorder %s2408_s12, 0 }
  0x20   : > { %3016 = sst [smem:[#allocation38_spill]] %s2213_s21  ;;  %p330_p2 = scmp.lt.s32.totalorder %s2249_s30, 5 }
  0x21   : > { %3017 = sst [smem:[#allocation39_spill]] %s2233_s26  ;;  %s2251_s14 = smov [#allocation15]  }
  0x22   : > { %3018 = sst [smem:[#allocation40_spill]] %s2237_s27  ;;  %p2413_p3 = pnand %p1410_p0, %p330_p2 }
  0x23   : > { %s343_s15 = sshll.u32 %s2251_s14, 4  ;;  %s2252_s16 = smov [#allocation16]   ;;  %s344_s15 = int_to_ptr.vmem [resolvable:$true] %s343_s15 }
  0x24   : > { %s3019_s13 = scalar_select %p2413_p3, 1, 0 }
  0x25   : > { %p1575_p4 = pneg %p2413_p3  ;;  %s353_s11 = sshll.u32 %s2252_s16, 4  ;;  %s2425_s11 = int_to_ptr.vmem [resolvable:$true] %s353_s11 }
  0x26   : > { %3020 = sst [smem:[#allocation41_spill]] %s3019_s13  ;;  %s2253_s10 = smov [#allocation19]  }
  0x27   : > { %p2421_p5 = pnand %p1575_p4, %p2981_p1  ;;  %s2427_s26 = sshll.u32 %s2253_s10, 4  ;;  %s381_s26 = int_to_ptr.vmem [resolvable:$true] %s2427_s26 }
  0x28   : > { %s3022_s4 = sld [smem:[#allocation47_spill]] }
  0x29   : > { %s3021_s9 = scalar_select %p2421_p5, 1, 0 }
  0x2a   : > { %p2437_p7 = pneg %p2421_p5 }
  0x2e   : > { %s1765_s14 = scalar_lea.hbm %s3022_s4, 64 }
  0x2f   : > { %p1766_p6 = scmp.ne.s32.totalorder %s3022_s4, %s1765_s14  ;;  %p1772_p10 = scmp.lt.u32.totalorder %s1765_s14, %s3022_s4 }
  0x31   : > { %p1768_p8 = pnand %p2437_p7, %p1766_p6 }
  0x33   : > { %p1769_p9 = pneg %p1768_p8 }
  0x35   : > { %p1774_p11 = pnand %p1772_p10, %p1769_p9 }
  0x37   : > { %1777 = shalt.err (!%p1774_p11)
}
  0x38   : > { %s1778_s3 = scalar_lea.vmem %s344_s15, 64  ;;  %p1786_p2 = scmp.lt.s32.totalorder %s344_s15, %s344_s15 }
  0x39   : > { %p1779_p12 = scmp.ne.s32.totalorder %s344_s15, %s1778_s3  ;;  %p1787_p4 = scmp.lt.s32.totalorder %s1778_s3, %s1778_s3 }
  0x3b   : > { %p1781_p13 = pnand %p1779_p12, %p2437_p7  ;;  %p1788_p1 = por %p1787_p4, %p1786_p2 }
  0x3d   : > { %p1782_p0 = pneg %p1781_p13 }
  0x3f   : > { %p1789_p3 = pnand %p1788_p1, %p1782_p0 }
  0x41   : > { %1792 = shalt.err (!%p1789_p3)
}
  0x42   : > { %1578 = dma.hbm_to_vmem [thread:$0]  (!%p2421_p5), %s3022_s4, 64, %s344_s15, [#allocation14]  }
  0x43   : > { %s3024_s5 = sld [smem:[#allocation48_spill]] }
  0x49   : > { %s1793_s14 = scalar_lea.hbm %s3024_s5, 128 }
  0x4a   : > { %p1794_p6 = scmp.ne.s32.totalorder %s3024_s5, %s1793_s14  ;;  %p1800_p1 = scmp.lt.u32.totalorder %s1793_s14, %s3024_s5 }
  0x4c   : > { %p1796_p8 = pnand %p1794_p6, %p2437_p7 }
  0x4e   : > { %p1797_p9 = pneg %p1796_p8 }
  0x50   : > { %p1802_p3 = pnand %p1800_p1, %p1797_p9 }
  0x52   : > { %1805 = shalt.err (!%p1802_p3)
}
  0x53   : > { %s1806_s15 = scalar_lea.vmem %s2425_s11, 128  ;;  %p1814_p13 = scmp.lt.s32.totalorder %s2425_s11, %s2425_s11 }
  0x54   : > { %p1807_p10 = scmp.ne.s32.totalorder %s2425_s11, %s1806_s15  ;;  %p1815_p0 = scmp.lt.s32.totalorder %s1806_s15, %s1806_s15 }
  0x56   : > { %p1809_p11 = pnand %p1807_p10, %p2437_p7  ;;  %p1816_p2 = por %p1815_p0, %p1814_p13 }
  0x58   : > { %p1810_p12 = pneg %p1809_p11 }
  0x5a   : > { %p1817_p4 = pnand %p1816_p2, %p1810_p12 }
  0x5c   : > { %1820 = shalt.err (!%p1817_p4)
}
  0x5d   : > { %s2985_s18 = smov 64   ;;  %s2986_s19 = smov 4  }
  0x5e   : > { %1581 = dma.hbm_to_vmem [thread:$0]  (!%p2421_p5), %s3024_s5, 128, %s2425_s11, [#allocation17], %s2985_s18, %s2985_s18, %s2986_s19  }
  0x5f   : > { %s3025_s7 = sld [smem:[#allocation50_spill]] }
  0x65   : > { %s1821_s14 = scalar_lea.hbm %s3025_s7, 16 }
  0x66   : > { %p1822_p6 = scmp.ne.s32.totalorder %s3025_s7, %s1821_s14  ;;  %p1828_p1 = scmp.lt.u32.totalorder %s1821_s14, %s3025_s7 }
  0x68   : > { %p1824_p8 = pnand %p1822_p6, %p2437_p7 }
  0x6a   : > { %p1825_p9 = pneg %p1824_p8 }
  0x6c   : > { %p1830_p3 = pnand %p1828_p1, %p1825_p9 }
  0x6e   : > { %1833 = shalt.err (!%p1830_p3)
}
  0x6f   : > { %s1834_s2 = scalar_lea.vmem %s381_s26, 16  ;;  %s1841_s11 = scalar_lea.vmem %s381_s26, 32 }
  0x70   : > { %p1835_p10 = scmp.ne.s32.totalorder %s381_s26, %s1834_s2  ;;  %p1842_p13 = scmp.lt.s32.totalorder %s381_s26, %s381_s26 }
  0x71   : > { %p1843_p0 = scmp.lt.s32.totalorder %s1841_s11, %s1834_s2 }
  0x72   : > { %p1837_p11 = pnand %p1835_p10, %p2437_p7 }
  0x73   : > { %p1844_p2 = por %p1843_p0, %p1842_p13 }
  0x74   : > { %p1838_p12 = pneg %p1837_p11 }
  0x76   : > { %p1845_p4 = pnand %p1844_p2, %p1838_p12 }
  0x78   : > { %1848 = shalt.err (!%p1845_p4)
}
  0x79   : > { %1587 = dma.hbm_to_vmem [thread:$0]  (!%p2421_p5), %s3025_s7, 16, %s381_s26, [#allocation20]  }
  0x7a   : > { %s44_s4 = sadd.s32 1, %s2241_s28  ;;  %s47_s13 = sadd.s32 1, %s2245_s29 }
  0x7b   : > { %p45_p6 = scmp.ge.s32.totalorder %s44_s4, 2  ;;  %p2992_p8 = scmp.eq.s32.totalorder %s2249_s30, 0 }
  0x7c   : > { %s81_s14 = smul.u32 %s2241_s28, %s2245_s29  ;;  %s86_s10 = sadd.s32 1, %s2217_s22 }
  0x7d   : > { %s3101_s4 = smov (%p45_p6, %s44_s4), 0  ;;  %s3103_s13 = smov (!%p45_p6, %s47_s13), %s2245_s29 }
  0x7e   : > { %p93_p9 = scmp.ne.s32.totalorder %s2217_s22, %s2213_s21  ;;  %p49_p1 = scmp.ge.s32.totalorder %s3103_s13, 2 }
  0x7f   : > { %p99_p3 = scmp.ne.s32.totalorder %s2213_s21, %s2209_s20  ;;  %s109_s3 = ssub.s32 %s2241_s28, %s3101_s4 }
  0x80   : > { %p2513_p10 = por %p93_p9, %p2992_p8  ;;  %s3105_s13 = smov (%p49_p1, %s3103_s13), 0 }
  0x81   : > { %p3027_p11 = scmp.eq.s32.totalorder %s2408_s12, 0  ;;  %p2527_p13 = scmp.eq.s32.totalorder %s109_s3, 0 }
  0x82   : > { %s82_s20 = smul.u32 %s3105_s13, %s3101_s4  ;;  %p2991_p0 = scmp.lt.s32.totalorder %s2249_s30, 4 }
  0x83   : > { %p2523_p12 = por %p99_p3, %p3027_p11  ;;  %s2996_s11 = sand.u32 1, %s2249_s30  }
  0x84   : > { %s3030_s2 = scalar_select %p2527_p13, 1, 0 }
  0x85   : > { %s3028_s15 = scalar_select %p2523_p12, 1, 0 }
  0x86   : > { %s424_s27 = sand.u32 1, %s2217_s22   ;;  %s83_s17 = ssub.s32 %s81_s14, %s82_s20 }
  0x87   : > { %3029 = sst [smem:[#allocation42_spill]] %s3028_s15  ;;  %p84_p2 = scmp.eq.s32.totalorder %s83_s17, 0 }
  0x88   : > { %s1419_s18 = sshll.u32 %s424_s27, 2  ;;  %s1420_s19 = sshll.u32 %s81_s14, 6 }
  0x89   : > { %s2537_s5 = scalar_select %p84_p2, %s2217_s22, %s86_s10  }
  0x8a   : > { %s3031_s1 = sld [smem:[#allocation44_spill]]  ;;  %s426_s3 = scalar_lea.vmem [#allocation10], %s1419_s18 }
  0x8b   : > { %s434_s15 = sshll.u32 %s426_s3, 4  ;;  %p2550_p4 = pnand %p2991_p0, %p2513_p10  ;;  %s2544_s15 = int_to_ptr.vmem [resolvable:$true] %s434_s15 }
  0x8c   : > { %s2256_s14 = smov [#allocation18]   ;;  %s2558_s21 = scalar_lea.sflag [#allocation11], %s2996_s11 }
  0x8d   : > { %s2554_s7 = sshll.u32 %s2256_s14, 4  ;;  %p1851_p9 = pneg %p2550_p4  ;;  %s367_s7 = int_to_ptr.vmem [resolvable:$true] %s2554_s7 }
  0x90   : > { %s2542_s0 = scalar_lea.hbm %s3031_s1, %s1420_s19  ;;  %s1854_s26 = scalar_lea.hbm %s3031_s1, 128 }
  0x91   : > { %s1849_s19 = scalar_lea.hbm %s2542_s0, 64  ;;  %p1855_p10 = scmp.lt.u32.totalorder %s2542_s0, %s3031_s1 }
  0x92   : > { %p1850_p6 = scmp.ne.s32.totalorder %s2542_s0, %s1849_s19  ;;  %p1856_p11 = scmp.lt.u32.totalorder %s1854_s26, %s1849_s19 }
  0x93   : > { %p1858_p0 = scmp.lt.u32.totalorder %s1849_s19, %s2542_s0 }
  0x94   : > { %p1852_p1 = pnand %p1851_p9, %p1850_p6  ;;  %p1857_p2 = por %p1856_p11, %p1855_p10 }
  0x96   : > { %p1853_p3 = pneg %p1852_p1  ;;  %p1859_p8 = por %p1858_p0, %p1857_p2 }
  0x98   : > { %p1860_p12 = pnand %p1859_p8, %p1853_p3 }
  0x9a   : > { %1863 = shalt.err (!%p1860_p12)
}
  0x9b   : > { %s1864_s3 = scalar_lea.vmem %s2544_s15, 64  ;;  %s2257_s14 = smov [#allocation10]  }
  0x9c   : > { %p1865_p6 = scmp.ne.s32.totalorder %s2544_s15, %s1864_s3  ;;  %s1869_s18 = sshll.u32 %s2257_s14, 4  ;;  %s1870_s18 = int_to_ptr.vmem [resolvable:$false] %s1869_s18 }
  0x9d   : > { %s1871_s10 = scalar_lea.vmem %s1870_s18, 128  ;;  %p1872_p5 = scmp.lt.s32.totalorder %s2544_s15, %s1870_s18 }
  0x9e   : > { %p1867_p1 = pnand %p1865_p6, %p1851_p9  ;;  %p1873_p10 = scmp.lt.s32.totalorder %s1871_s10, %s1864_s3 }
  0xa0   : > { %p1868_p13 = pneg %p1867_p1  ;;  %p1874_p11 = por %p1873_p10, %p1872_p5 }
  0xa2   : > { %p1875_p0 = pnand %p1874_p11, %p1868_p13 }
  0xa4   : > { %1878 = shalt.err (!%p1875_p0)
}
  0xa5   : > { %1597 = dma.hbm_to_vmem [thread:$0]  (!%p2550_p4), %s2542_s0, 64, %s2544_s15, %s2558_s21  }
  0xa6   : > { %s3033_s6 = sld [smem:[#allocation49_spill]] }
  0xac   : > { %s1879_s27 = scalar_lea.hbm %s3033_s6, 128 }
  0xad   : > { %p1880_p8 = scmp.ne.s32.totalorder %s3033_s6, %s1879_s27  ;;  %p1886_p13 = scmp.lt.u32.totalorder %s1879_s27, %s3033_s6 }
  0xaf   : > { %p1882_p5 = pnand %p1880_p8, %p2437_p7 }
  0xb1   : > { %p1883_p12 = pneg %p1882_p5 }
  0xb3   : > { %p1888_p9 = pnand %p1886_p13, %p1883_p12 }
  0xb5   : > { %1891 = shalt.err (!%p1888_p9)
}
  0xb6   : > { %s1892_s18 = scalar_lea.vmem %s367_s7, 128  ;;  %p1900_p6 = scmp.lt.s32.totalorder %s367_s7, %s367_s7 }
  0xb7   : > { %p1893_p4 = scmp.ne.s32.totalorder %s367_s7, %s1892_s18  ;;  %p1901_p1 = scmp.lt.s32.totalorder %s1892_s18, %s1892_s18 }
  0xb9   : > { %p1895_p3 = pnand %p1893_p4, %p2437_p7  ;;  %p1902_p10 = por %p1901_p1, %p1900_p6 }
  0xbb   : > { %p1896_p2 = pneg %p1895_p3 }
  0xbd   : > { %p1903_p11 = pnand %p1902_p10, %p1896_p2 }
  0xbf   : > { %1906 = shalt.err (!%p1903_p11)
}
  0xc0   : > { %p3034_p0 = scmp.ne.s32.totalorder %s3021_s9, 0  ;;  %s3035_s0 = smov 4  }
  0xc1   : > { %s3036_s15 = smov 64   ;;  %s2258_s26 = smov [#allocation21]  }
  0xc2   : > { %1584 = dma.hbm_to_vmem [thread:$0]  (!%p3034_p0), %s3033_s6, 128, %s367_s7, [#allocation17], %s3036_s15, %s3036_s15, %s3035_s0  }
  0xc3   : > { %s391_s27 = sshll.u32 %s2258_s26, 4  ;;  %s3037_s8 = sld [smem:[#allocation51_spill]]  ;;  %s392_s27 = int_to_ptr.vmem [resolvable:$true] %s391_s27 }
  0xc9   : > { %s1907_s3 = scalar_lea.hbm %s3037_s8, 16 }
  0xca   : > { %p1908_p8 = scmp.ne.s32.totalorder %s3037_s8, %s1907_s3  ;;  %p1914_p13 = scmp.lt.u32.totalorder %s1907_s3, %s3037_s8 }
  0xcc   : > { %p1910_p5 = pnand %p1908_p8, %p2437_p7 }
  0xce   : > { %p1911_p12 = pneg %p1910_p5 }
  0xd0   : > { %p1916_p9 = pnand %p1914_p13, %p1911_p12 }
  0xd2   : > { %1919 = shalt.err (!%p1916_p9)
}
  0xd3   : > { %s1920_s7 = scalar_lea.vmem %s392_s27, 16  ;;  %s1927_s0 = scalar_lea.vmem %s392_s27, 32 }
  0xd4   : > { %p1921_p4 = scmp.ne.s32.totalorder %s392_s27, %s1920_s7  ;;  %p1928_p6 = scmp.lt.s32.totalorder %s392_s27, %s392_s27 }
  0xd5   : > { %p1929_p1 = scmp.lt.s32.totalorder %s1927_s0, %s1920_s7 }
  0xd6   : > { %p1923_p3 = pnand %p1921_p4, %p2437_p7 }
  0xd7   : > { %p1930_p10 = por %p1929_p1, %p1928_p6 }
  0xd8   : > { %p1924_p2 = pneg %p1923_p3 }
  0xda   : > { %p1931_p11 = pnand %p1930_p10, %p1924_p2 }
  0xdc   : > { %1934 = shalt.err (!%p1931_p11)
}
  0xdd   : > { %1590 = dma.hbm_to_vmem [thread:$0]  (!%p3034_p0), %s3037_s8, 16, %s392_s27, [#allocation20]  }
  0xde   : > { %s51_s1 = ssub.s32 1, %s2245_s29  ;;  %s53_s16 = ssub.s32 1, %s3105_s13 }
  0xdf   : > { %s52_s9 = smul.u32 %s2241_s28, %s51_s1  ;;  %s58_s11 = sadd.s32 1, %s2229_s25 }
  0xe0   : > { %s54_s19 = smul.u32 %s53_s16, %s3101_s4  ;;  %p65_p7 = scmp.ne.s32.totalorder %s2229_s25, %s2225_s24 }
  0xe1   : > { %p71_p8 = scmp.ne.s32.totalorder %s2225_s24, %s2221_s23  ;;  %s402_s26 = sand.u32 1, %s2229_s25  }
  0xe2   : > { %s55_s17 = ssub.s32 %s52_s9, %s54_s19  ;;  %p3038_p5 = scmp.eq.s32.totalorder %s2249_s30, 0 }
  0xe3   : > { %p56_p13 = scmp.eq.s32.totalorder %s55_s17, 0  ;;  %p3039_p9 = scmp.eq.s32.totalorder %s2408_s12, 0 }
  0xe4   : > { %p67_p12 = por %p3038_p5, %p65_p7  ;;  %s1417_s3 = sshll.u32 %s402_s26, 3 }
  0xe5   : > { %p2640_p4 = por %p3039_p9, %p71_p8  ;;  %s1418_s20 = sshll.u32 %s52_s9, 7 }
  0xe6   : > { %s2645_s27 = scalar_select %p56_p13, %s2229_s25, %s58_s11  }
  0xe7   : > { %s3040_s14 = scalar_select %p2640_p4, 1, 0 }
  0xe8   : > { %s3041_s0 = sld [smem:[#allocation43_spill]]  ;;  %s406_s23 = scalar_lea.vmem [#allocation7], %s1417_s3 }
  0xe9   : > { %s415_s10 = sshll.u32 %s406_s23, 4  ;;  %p3042_p0 = scmp.lt.s32.totalorder %s2249_s30, 4  ;;  %s2652_s10 = int_to_ptr.vmem [resolvable:$true] %s415_s10 }
  0xea   : > { %s403_s16 = scalar_lea.sflag [#allocation8], %s402_s26 }
  0xeb   : > { %p2656_p3 = pnand %p3042_p0, %p67_p12 }
  0xed   : > { %p1937_p6 = pneg %p2656_p3 }
  0xee   : > { %s2650_s15 = scalar_lea.hbm %s3041_s0, %s1418_s20  ;;  %s1940_s17 = scalar_lea.hbm %s3041_s0, 256 }
  0xef   : > { %s1935_s9 = scalar_lea.hbm %s2650_s15, 128  ;;  %p1941_p11 = scmp.lt.u32.totalorder %s2650_s15, %s3041_s0 }
  0xf0   : > { %p1936_p2 = scmp.ne.s32.totalorder %s2650_s15, %s1935_s9  ;;  %p1942_p7 = scmp.lt.u32.totalorder %s1940_s17, %s1935_s9 }
  0xf1   : > { %p1944_p5 = scmp.lt.u32.totalorder %s1935_s9, %s2650_s15 }
  0xf2   : > { %p1938_p1 = pnand %p1937_p6, %p1936_p2  ;;  %p1943_p8 = por %p1942_p7, %p1941_p11 }
  0xf4   : > { %p1939_p10 = pneg %p1938_p1  ;;  %p1945_p12 = por %p1944_p5, %p1943_p8 }
  0xf6   : > { %p1946_p13 = pnand %p1945_p12, %p1939_p10 }
  0xf8   : > { %1949 = shalt.err (!%p1946_p13)
}
  0xf9   : > { %s1950_s26 = scalar_lea.vmem %s2652_s10, 128  ;;  %s2259_s18 = smov [#allocation7]  }
  0xfa   : > { %p1951_p9 = scmp.ne.s32.totalorder %s2652_s10, %s1950_s26  ;;  %s1955_s7 = sshll.u32 %s2259_s18, 4  ;;  %s1956_s7 = int_to_ptr.vmem [resolvable:$false] %s1955_s7 }
  0xfb   : > { %s1957_s23 = scalar_lea.vmem %s1956_s7, 256  ;;  %p1958_p1 = scmp.lt.s32.totalorder %s2652_s10, %s1956_s7 }
  0xfc   : > { %p1953_p0 = pnand %p1951_p9, %p1937_p6  ;;  %p1959_p11 = scmp.lt.s32.totalorder %s1957_s23, %s1950_s26 }
  0xfe   : > { %p1954_p2 = pneg %p1953_p0  ;;  %p1960_p7 = por %p1959_p11, %p1958_p1 }
 0x100   : > { %p1961_p8 = pnand %p1960_p7, %p1954_p2 }
 0x102   : > { %1964 = shalt.err (!%p1961_p8)
}
 0x103   : > { %s3044_s9 = sld [smem:[#allocation37_spill]]  ;;  %s3045_s11 = sld [smem:[#allocation36_spill]] }
 0x104   : > { %s3046_s19 = sld [smem:[#allocation35_spill]]  ;;  %p3047_p6 = scmp.ne.s32.totalorder %s3030_s2, 0 }
 0x105   : > { %1594 = dma.hbm_to_vmem [thread:$0]  (!%p2656_p3), %s2650_s15, 128, %s2652_s10, %s403_s16  }
 0x106   : > { %s2997_s20 = sshll.u32 %s2241_s28, 7  ;;  %p3048_p12 = scmp.eq.s32.totalorder %s2249_s30, 0 }
 0x107   : > { %p3049_p9 = scmp.eq.s32.totalorder %s2408_s12, 0  ;;  %s3051_s10 = sld [smem:[#allocation45_spill]] }
 0x108   : > { %p3052_p3 = scmp.lt.s32.totalorder %s2249_s30, 4 }
 0x109   : > { %s112_s17 = sadd.s32 1, %s3044_s9  ;;  %p119_p10 = scmp.ne.s32.totalorder %s3044_s9, %s3045_s11 }
 0x10a   : > { %s2689_s3 = scalar_select %p3047_p6, %s3044_s9, %s112_s17  }
 0x10b   : > { %p125_p5 = scmp.ne.s32.totalorder %s3045_s11, %s3046_s19  ;;  %s443_s1 = sand.u32 1, %s3044_s9  }
 0x10c   : > { %p121_p13 = por %p119_p10, %p3048_p12  ;;  %s2705_s18 = sshll.u32 %s443_s1, 3 }
 0x10d   : > { %p2701_p0 = por %p125_p5, %p3049_p9  ;;  %s2712_s2 = scalar_lea.hbm %s3051_s10, %s2997_s20 }
 0x10e   : > { %p2716_p2 = pnand %p3052_p3, %p121_p13  ;;  %s445_s23 = scalar_lea.vmem [#allocation12], %s2705_s18 }
 0x10f   : > { %s3050_s26 = scalar_select %p2701_p0, 1, 0 }
 0x110   : > { %s452_s9 = sshll.u32 %s445_s23, 4  ;;  %s1965_s11 = scalar_lea.hbm %s2712_s2, 128  ;;  %s453_s9 = int_to_ptr.vmem [resolvable:$true] %s452_s9 }
 0x111   : > { %p1966_p1 = scmp.ne.s32.totalorder %s2712_s2, %s1965_s11  ;;  %p1967_p11 = pneg %p2716_p2 }
 0x112   : > { %s1970_s1 = scalar_lea.hbm %s3051_s10, 256  ;;  %p1971_p6 = scmp.lt.u32.totalorder %s2712_s2, %s3051_s10 }
 0x113   : > { %p1968_p7 = pnand %p1967_p11, %p1966_p1  ;;  %p1972_p10 = scmp.lt.u32.totalorder %s1970_s1, %s1965_s11 }
 0x114   : > { %p1974_p12 = scmp.lt.u32.totalorder %s1965_s11, %s2712_s2 }
 0x115   : > { %p1969_p8 = pneg %p1968_p7  ;;  %p1973_p5 = por %p1972_p10, %p1971_p6 }
 0x117   : > { %p1975_p13 = por %p1974_p12, %p1973_p5 }
 0x119   : > { %p1976_p9 = pnand %p1975_p13, %p1969_p8 }
 0x11b   : > { %1979 = shalt.err (!%p1976_p9)
}
 0x11c   : > { %s1980_s23 = scalar_lea.vmem %s453_s9, 128  ;;  %s2260_s20 = smov [#allocation12]  }
 0x11d   : > { %p1981_p3 = scmp.ne.s32.totalorder %s453_s9, %s1980_s23  ;;  %s1985_s19 = sshll.u32 %s2260_s20, 4  ;;  %s1986_s19 = int_to_ptr.vmem [resolvable:$false] %s1985_s19 }
 0x11e   : > { %s1987_s17 = scalar_lea.vmem %s1986_s19, 256  ;;  %p1988_p0 = scmp.lt.s32.totalorder %s453_s9, %s1986_s19 }
 0x11f   : > { %p1983_p1 = pnand %p1981_p3, %p1967_p11  ;;  %p1989_p4 = scmp.lt.s32.totalorder %s1987_s17, %s1980_s23 }
 0x121   : > { %p1984_p7 = pneg %p1983_p1  ;;  %p1990_p6 = por %p1989_p4, %p1988_p0 }
 0x123   : > { %p1991_p10 = pnand %p1990_p6, %p1984_p7 }
 0x125   : > { %1994 = shalt.err (!%p1991_p10)
}
 0x126   : > { %1600 = dma.hbm_to_vmem [thread:$0]  (!%p2716_p2), %s2712_s2, 128, %s453_s9, %s2558_s21  }
 0x127   : > { %s3054_s11 = sshll.u32 %s2241_s28, 7  ;;  %s3055_s20 = sld [smem:[#allocation46_spill]] }
 0x128   : > { %s463_s23 = scalar_lea.vmem [#allocation13], %s2705_s18  ;;  %s3057_s17 = sand.u32 1, %s2249_s30  }
 0x129   : > { %s470_s19 = sshll.u32 %s463_s23, 4  ;;  %s460_s6 = scalar_lea.sflag [#allocation14], %s3057_s17  ;;  %s471_s19 = int_to_ptr.vmem [resolvable:$true] %s470_s19 }
 0x12d   : > { %s3056_s15 = smov %s3055_s20  ;;  %s2748_s0 = scalar_lea.hbm %s3055_s20, %s3054_s11 }
 0x12e   : > { %s1995_s8 = scalar_lea.hbm %s2748_s0, 128  ;;  %s2000_s9 = scalar_lea.hbm %s3056_s15, 256 }
 0x12f   : > { %p1996_p4 = scmp.ne.s32.totalorder %s2748_s0, %s1995_s8  ;;  %p2001_p5 = scmp.lt.u32.totalorder %s2748_s0, %s3056_s15 }
 0x130   : > { %p2002_p12 = scmp.lt.u32.totalorder %s2000_s9, %s1995_s8  ;;  %p2004_p9 = scmp.lt.u32.totalorder %s1995_s8, %s2748_s0 }
 0x131   : > { %p1998_p0 = pnand %p1996_p4, %p1967_p11 }
 0x132   : > { %p2003_p13 = por %p2002_p12, %p2001_p5 }
 0x133   : > { %p1999_p8 = pneg %p1998_p0 }
 0x134   : > { %p2005_p3 = por %p2004_p9, %p2003_p13 }
 0x136   : > { %p2006_p1 = pnand %p2005_p3, %p1999_p8 }
 0x138   : > { %2009 = shalt.err (!%p2006_p1)
}
 0x139   : > { %s2010_s18 = scalar_lea.vmem %s471_s19, 128  ;;  %s2261_s7 = smov [#allocation13]  }
 0x13a   : > { %p2011_p7 = scmp.ne.s32.totalorder %s471_s19, %s2010_s18  ;;  %s2015_s20 = sshll.u32 %s2261_s7, 4  ;;  %s2016_s20 = int_to_ptr.vmem [resolvable:$false] %s2015_s20 }
 0x13b   : > { %s2017_s23 = scalar_lea.vmem %s2016_s20, 256  ;;  %p2018_p4 = scmp.lt.s32.totalorder %s471_s19, %s2016_s20 }
 0x13c   : > { %p2013_p6 = pnand %p2011_p7, %p1967_p11  ;;  %p2019_p0 = scmp.lt.s32.totalorder %s2017_s23, %s2010_s18 }
 0x13e   : > { %p2014_p10 = pneg %p2013_p6  ;;  %p2020_p5 = por %p2019_p0, %p2018_p4 }
 0x140   : > { %p2021_p12 = pnand %p2020_p5, %p2014_p10 }
 0x142   : > { %2024 = shalt.err (!%p2021_p12)
}
 0x143   : > { %1603 = dma.hbm_to_vmem [thread:$0]  (!%p2716_p2), %s2748_s0, 128, %s471_s19, %s460_s6  }
 0x144   : > { %s3058_s8 = sld [smem:[#allocation41_spill]] }
 0x14a   : > { %p3059_p8 = scmp.ne.s32.totalorder %s3058_s8, 0 }
 0x14b   : > { %s481_s17 = sand.u32 (!%p3059_p8), 1, %s2225_s24   ;;  %p3060_p11 = scmp.ne.s32.totalorder (!%p3059_p8), %s3040_s14, 0 }
 0x14c   : > { %479 = sbr.rel (%p3059_p8) target bundleno = 1725 (0x6bd), region = 56  ;;  %s2775_s21 = sshll.u32 (!%p3059_p8), %s481_s17, 3 }
 0x14d   : > { %s482_s2 = scalar_lea.sflag (!%p3059_p8), [#allocation8], %s481_s17  ;;  %s485_s9 = scalar_lea.vmem (!%p3059_p8), [#allocation7], %s2775_s21 }
 0x153   : > { %2160 = dma.done.wait (%p3060_p11), %s482_s2, 128  }
 0x154   : > { %2162 = vsyncadd (%p3060_p11), %s482_s2, 4294967168  ;;  %s3061_s16 = sld [smem:[#allocation38_spill]]  ;;  %s3062_s11 = sld [smem:[#allocation42_spill]] }
 0x155   : > { %s490_s6 = sand.u32 1, %s2408_s12  }
 0x156   : > { %s491_s1 = scalar_lea.sflag [#allocation11], %s490_s6 }
 0x15a   : > { %s492_s0 = sand.u32 1, %s3061_s16   ;;  %p3063_p2 = scmp.ne.s32.totalorder %s3062_s11, 0 }
 0x15b   : > { %s2784_s19 = sshll.u32 %s492_s0, 2 }
 0x15c   : > { %s494_s18 = scalar_lea.vmem [#allocation10], %s2784_s19 }
 0x15d   : > { %2164 = dma.done.wait (%p3063_p2), %s491_s1, 64  }
 0x15e   : > { %2166 = vsyncadd (%p3063_p2), %s491_s1, 4294967232  ;;  %s3064_s7 = sld [smem:[#allocation36_spill]]  ;;  %p3065_p13 = scmp.ne.s32.totalorder %s3050_s26, 0 }
 0x164   : > { %s501_s20 = sand.u32 1, %s3064_s7  }
 0x165   : > { %s2792_s14 = sshll.u32 %s501_s20, 3 }
 0x166   : > { %s503_s23 = scalar_lea.vmem [#allocation12], %s2792_s14 }
 0x167   : > { %2168 = dma.done.wait (%p3065_p13), %s491_s1, 128  }
 0x168   : > { %2170 = vsyncadd (%p3065_p13), %s491_s1, 4294967168  ;;  %s509_s8 = scalar_lea.sflag [#allocation14], %s490_s6  ;;  %s512_s17 = scalar_lea.vmem [#allocation13], %s2792_s14 }
 0x169   : > { %2172 = dma.done.wait (%p3065_p13), %s509_s8, 128  }
 0x16a   : > { %2174 = vsyncadd (%p3065_p13), %s509_s8, 4294967168  ;;  %p3066_p9 = scmp.eq.s32.totalorder %s2408_s12, 0 }
 0x16c   : > { %2176 = dma.done.wait (%p3066_p9), [#allocation14], 64   ;;  %p3067_p3 = pmov %p3066_p9 }
 0x16e   : > { %2178 = vsyncadd (%p3067_p3), [#allocation14], 4294967232  ;;  %p3068_p1 = pmov %p3067_p3 }
 0x170   : > { %2180 = dma.done.wait (%p3068_p1), [#allocation17], 256   ;;  %p3069_p7 = pmov %p3068_p1 }
 0x171   : > { %p3070_p6 = pmov %p3068_p1 }
 0x172   : > { %2182 = vsyncadd (%p3069_p7), [#allocation17], 4294967040 }
 0x173   : > { %2184 = dma.done.wait (%p3070_p6), [#allocation20], 32   ;;  %p3071_p10 = pmov %p3068_p1 }
 0x174   : > { %s3072_s26 = sld [smem:[#allocation40_spill]]  ;;  %s3073_s2 = sld [smem:[#allocation39_spill]] }
 0x175   : > { %2186 = vsyncadd (%p3071_p10), [#allocation20], 4294967264 }
 0x17a   : > { %p586_p4 = scmp.eq.s32.totalorder %s3072_s26, 0  ;;  %p587_p0 = scmp.eq.s32.totalorder %s3073_s2, 0 }
 0x17c   : > { %p588_p5 = pnand %p587_p0, %p586_p4 }
 0x17d   : > { %vm592_vm0 = vcmask (!%p588_p5), 261120   ;;  %vm595_vm1 = vcmask (!%p588_p5), 7168   ;;  %vm598_vm2 = vcmask (!%p588_p5), 254976   ;;  %v2262_v0 = vmov (!%p588_p5), 0.0  }
 0x17e   : > { %591 = sbr.rel (%p588_p5) target bundleno = 389 (0x185), region = 96  ;;  %593 = vst.msk [vmem:[#allocation2] sm:$0xff] (!%p588_p5), %vm592_vm0, %v2262_v0  ;;  %594 = vst.msk [vmem:[#allocation3] sm:$0xff] (!%p588_p5), %vm592_vm0, %v2262_v0 }
 0x17f   : > { %596 = vst.msk [vmem:[#allocation4] sm:$0xff] (!%p588_p5), %vm595_vm1, %v2262_v0  ;;  %597 = vst.msk [vmem:[#allocation5] sm:$0xff] (!%p588_p5), %vm595_vm1, %v2262_v0 }
 0x180   : > { %599 = vst.msk [vmem:[#allocation6] sm:$0x3] (!%p588_p5), %vm598_vm2, %v2262_v0 }
 0x185 PF: > { %v600_v1 = vld [vmem:[%s503_s23] sm:$0xff]  ;;  %v2263_v2 = vmov 0   ;;  %v610_v3 = vld [vmem:[%s512_s17] sm:$0xff]  ;;  %v601_v4 = vlaneseq  ;;  %v2264_v7 = vmov 0.0   ;;  %s3074_s16 = sld [smem:[#allocation40_spill]] }
 0x186   : > { %1755 = vset.pattern.permute.xlu0 %v2263_v2 }
 0x187   : > { %604 = vperm.xlu0 %1755, %v600_v1   ;;  %v602_v5 = vand.u32 127, %v601_v4 }
 0x18b   : > { %612 = vperm.xlu0 %1755, %v610_v3   ;;  %p1437_p12 = scmp.ne.s32.totalorder %s3074_s16, 0 }
 0x18c   : > { %v621_v13 = vld [vmem:[%s485_s9] sm:$0xff] (!%p1437_p12)  ;;  %vm644_vm5 = vcmask (!%p1437_p12), 1043456   ;;  %v2265_v14 = vmov (!%p1437_p12), 0.0   ;;  %vm2266_vm6 = vmmov (!%p1437_p12), 0   ;;  %vm640_vm7 = vcmask (!%p1437_p12), 64512   ;;  %v800_v38 = vld [vmem:[#allocation5] sm:$0xff] (!%p1437_p12) }
 0x18d   : > { %1476 = vmatprep.subr.bf16.mxu0 (!%p1437_p12), %v2265_v14  ;;  %v622_v15 = vpack.c.bf16 (!%p1437_p12), %v621_v13, %v621_v13  ;;  %1478 = vmatprep.mubr.msk.bf16.mxu0 (!%p1437_p12), %vm2266_vm6, %v2265_v14  ;;  %v2267_v17 = vmov (!%p1437_p12), 0   ;;  %v623_v21 = vld [vmem:[#allocation2] sm:$0xff] (!%p1437_p12)  ;;  %vm689_vm8 = vcmask (!%p1437_p12), 261120   ;;  %v691_v26 = vld [vmem:[#allocation3] sm:$0xff] (!%p1437_p12)  ;;  %v753_v32 = vld [vmem:[#allocation4] sm:$0xff] (!%p1437_p12)  ;;  %vm798_vm9 = vcmask (!%p1437_p12), 7168  }
 0x18e   : > { %1482 = vmatprep.subr.bf16.mxu1 (!%p1437_p12), %v2265_v14  ;;  %1484 = vmatprep.mubr.msk.bf16.mxu1 (!%p1437_p12), %vm2266_vm6, %v2265_v14  ;;  %v755_v18 = vsel (!%p1437_p12), %vm644_vm5, 1065369472, %v2267_v17 }
 0x18f   : > { %v646_v16 = vsel (!%p1437_p12), %vm644_vm5, %v622_v15, 0 }
 0x190   : > { %1477 = vmatpush3.bf16.msra.mxu0 (!%p1437_p12), %v646_v16  ;;  %1483 = vmatpush3.bf16.msra.mxu1 (!%p1437_p12), %v646_v16 }
 0x191   : > { %1488 = vmatprep.subr.bf16.mxu0 (!%p1437_p12), %v2265_v14  ;;  %1494 = vmatprep.subr.bf16.mxu1 (!%p1437_p12), %v2265_v14 }
 0x206   : > { %v605_v6 = vpop.permute.xlu0 %604 }
 0x207   : > { %vm606_vm3 = vcmp.eq.s32.totalorder %v602_v5, %v605_v6  ;;  %620 = sbr.rel (%p1437_p12) target bundleno = 853 (0x355), region = 100 }
 0x208   : > { %v1435_v8 = vsel %vm606_vm3, 1.0, %v2264_v7 }
 0x209   : > { %v2821_v9 = vpack.c.bf16 %v1435_v8, %v1435_v8 }
 0x20a   : > { %v613_v10 = vpop.permute.xlu0 %612 }
 0x20b   : > { %vm614_vm4 = vcmp.eq.s32.totalorder %v602_v5, %v613_v10  ;;  %624 = vxpose.xlu0.c.b16.start.end [1/1] (short) (narrow) (!%p1437_p12), %v2821_v9, 16 }
 0x20c   : > { %v1436_v11 = vsel %vm614_vm4, 1.0, %v2264_v7 }
 0x20d   : > { %v2823_v12 = vpack.c.bf16 %v1436_v11, %v1436_v11 }
 0x20f   : > { %692 = vxpose.xlu0.c.b16.start.end [1/1] (short) (narrow) %v2823_v12, 16 }
 0x271   : > { %v632_v19 = vpop.trf.xlu0 }
 0x272   : > { %1479 = vmatmul.mubr.msk.bf16.vlgmr.msra.gmra.mrb[0].mxu0 %vm640_vm7, %v632_v19 }
 0x273   : > { %1489 = vmatpush3.bf16.msra.mxu0 %v755_v18  ;;  %1490 = vmatprep.mubr.msk.bf16.mxu0 %vm2266_vm6, %v2265_v14 }
 0x275   : > { %v700_v20 = vpop.trf.xlu0 }
 0x276   : > { %1485 = vmatmul.mubr.msk.bf16.vlgmr.msra.gmra.mrb[0].mxu1 %vm640_vm7, %v700_v20 }
 0x277   : > { %1495 = vmatpush3.bf16.msra.mxu1 %v755_v18  ;;  %1496 = vmatprep.mubr.msk.bf16.mxu1 %vm2266_vm6, %v2265_v14 }
 0x27a   : > { %1491 = vmatmul.mubr.msk.bf16.vlgmr.msra.gmra.mrb[4].mxu0 %vm640_vm7, %v632_v19 }
 0x27e   : > { %1497 = vmatmul.mubr.msk.bf16.vlgmr.msra.gmra.mrb[4].mxu1 %vm640_vm7, %v700_v20 }
 0x345   : > { %v682_v22 = vpop.f32.mrb[0].mxu0 }
 0x346   : > { %v688_v23 = vadd.f32 %v682_v22, %v623_v21  ;;  %v1480_v24 = vpop.f32.mrb[1].mxu0 }
 0x347   : > { %v685_v25 = vpop.f32.mrb[2].mxu0 }
 0x348   : > { %690 = vst.msk [vmem:[#allocation2] sm:$0xff] %vm689_vm8, %v688_v23  ;;  %v1481_v27 = vpop.f32.mrb[3].mxu0 }
 0x349   : > { %v745_v28 = vpop.f32.mrb[0].mxu1 }
 0x34a   : > { %v751_v29 = vadd.f32 %v745_v28, %v691_v26  ;;  %v1486_v30 = vpop.f32.mrb[1].mxu1 }
 0x34b   : > { %v748_v31 = vpop.f32.mrb[2].mxu1 }
 0x34c   : > { %752 = vst.msk [vmem:[#allocation3] sm:$0xff] %vm689_vm8, %v751_v29  ;;  %v1487_v33 = vpop.f32.mrb[3].mxu1 }
 0x34d   : > { %v791_v34 = vpop.f32.mrb[4].mxu0 }
 0x34e   : > { %v797_v35 = vadd.f32 %v791_v34, %v753_v32  ;;  %v1492_v36 = vpop.f32.mrb[5].mxu0 }
 0x34f   : > { %v794_v37 = vpop.f32.mrb[6].mxu0 }
 0x350   : > { %799 = vst.msk [vmem:[#allocation4] sm:$0xff] %vm798_vm9, %v797_v35  ;;  %v1493_v39 = vpop.f32.mrb[7].mxu0 }
 0x351   : > { %v835_v40 = vpop.f32.mrb[4].mxu1 }
 0x352   : > { %v841_v41 = vadd.f32 %v835_v40, %v800_v38  ;;  %v1498_v42 = vpop.f32.mrb[5].mxu1 }
 0x353   : > { %v838_v43 = vpop.f32.mrb[6].mxu1 }
 0x354   : > { %842 = vst.msk [vmem:[#allocation5] sm:$0xff] %vm798_vm9, %v841_v41  ;;  %v1499_v44 = vpop.f32.mrb[7].mxu1 }
 0x355 PF: > { %s3075_s21 = sld [smem:[#allocation40_spill]] }
 0x35b   : > { %p843_p8 = scmp.eq.s32.totalorder %s3075_s21, 1 }
 0x35d   : > { %p844_p11 = pnand %p843_p8, %p587_p0 }
 0x35e   : > { %v917_v45 = vld [vmem:[#allocation5] sm:$0xff] (!%p844_p11)  ;;  %v849_v46 = vld [vmem:[#allocation4] sm:$0xff] (!%p844_p11)  ;;  %v2268_v47 = vmov (!%p844_p11), 0   ;;  %v2269_v53 = vmov (!%p844_p11), 0.0   ;;  %vm2270_vm10 = vmmov (!%p844_p11), 0   ;;  %v1758_v54 = vld [vmem:[#allocation18] sm:$0xff] (!%p844_p11)  }
 0x35f   : > { %847 = sbr.rel (%p844_p11) target bundleno = 1338 (0x53a), region = 104  ;;  %1756 = vset.pattern.permute.xlu0 (!%p844_p11), %v2268_v47  ;;  %v918_v48 = vmax.f32 (!%p844_p11), %v917_v45, 1.0  ;;  %v850_v49 = vmax.f32 (!%p844_p11), %v849_v46, 1.0  ;;  %v1757_v52 = vld [vmem:[#allocation16] sm:$0xff] (!%p844_p11)   ;;  %1500 = vmatprep.subr.bf16.mxu0 (!%p844_p11), %v2269_v53  ;;  %v916_v55 = vld [vmem:[#allocation3] sm:$0xff] (!%p844_p11)  ;;  %s2271_s11 = smov (!%p844_p11), 112  }
 0x360   : > { %1501 = vmatpush3.bf16.msra.mxu0 (!%p844_p11), %v1757_v52  ;;  %1506 = vmatprep.subr.bf16.mxu1 (!%p844_p11), %v2269_v53  ;;  %v921_v56 = vmax.f32 (!%p844_p11), %v916_v55, 0.0  ;;  %v848_v57 = vld [vmem:[#allocation2] sm:$0xff] (!%p844_p11)  ;;  %vm869_vm11 = vcmask (!%p844_p11), 130048   ;;  %vm914_vm12 = vcmask (!%p844_p11), 257024  }
 0x361   : > { %1759 = vrcp.f32 (!%p844_p11), %v918_v48  ;;  %1502 = vmatprep.mubr.msk.bf16.mxu0 (!%p844_p11), %vm2270_vm10, %v2269_v53  ;;  %1508 = vmatprep.mubr.msk.bf16.mxu1 (!%p844_p11), %vm2270_vm10, %v2269_v53  ;;  %v853_v60 = vmax.f32 (!%p844_p11), %v848_v57, 0.0 }
 0x362   : > { %1761 = vrcp.f32 (!%p844_p11), %v850_v49  ;;  %1507 = vmatpush3.bf16.msra.mxu1 (!%p844_p11), %v1758_v54 }
 0x36b   : > { %v1760_v50 = vpop.eup %1759 }
 0x36c   : > { %924 = vperm.xlu0 %1756, %v1760_v50   ;;  %v1762_v51 = vpop.eup %1761 }
 0x370   : > { %856 = vperm.xlu0 %1756, %v1762_v51  }
 0x3eb   : > { %v925_v58 = vpop.permute.xlu0 %924 }
 0x3ec   : > { %v927_v59 = vmul.f32 %v925_v58, %v921_v56 }
 0x3ee   : > { %v928_v61 = vpack.c.bf16 %v927_v59, %v927_v59 }
 0x3ef   : > { %v857_v62 = vpop.permute.xlu0 %856 }
 0x3f0   : > { %v859_v63 = vmul.f32 %v857_v62, %v853_v60  ;;  %932 = vrot.lane.b32.xlu1 %v928_v61, %s2271_s11 }
 0x3f2   : > { %v860_v0 = vpack.c.bf16 %v859_v63, %v859_v63 }
 0x3f4   : > { %1503 = vmatmul.mubr.msk.bf16.vlgmr.msra.gmra.mrb[0].mxu0 %vm869_vm11, %v860_v0 }
 0x462   : > { %v933_v1 = vpop.permute.xlu1 %932 }
 0x463   : > { %1509 = vmatmul.mubr.msk.bf16.vlgmr.msra.gmra.mrb[0].mxu1 %vm869_vm11, %v933_v1 }
 0x4c7   : > { %v907_v2 = vpop.f32.mrb[0].mxu0 }
 0x4c8   : > { %v913_v3 = vpack.c.bf16 %v907_v2, %v907_v2  ;;  %v1504_v5 = vpop.f32.mrb[1].mxu0 }
 0x4c9   : > { %v910_v6 = vpop.f32.mrb[2].mxu0 }
 0x4ca   : > { %915 = vst.msk [vmem:[#allocation22] sm:$0xf] %vm914_vm12, %v913_v3  ;;  %v1505_v7 = vpop.f32.mrb[3].mxu0 }
 0x536   : > { %v977_v8 = vpop.f32.mrb[0].mxu1 }
 0x537   : > { %v983_v10 = vpack.c.bf16 %v977_v8, %v977_v8  ;;  %v1510_v11 = vpop.f32.mrb[1].mxu1 }
 0x538   : > { %v980_v13 = vpop.f32.mrb[2].mxu1 }
 0x539   : > { %984 = vst.msk [vmem:[#allocation23] sm:$0xf] %vm914_vm12, %v983_v10  ;;  %v1511_v14 = vpop.f32.mrb[3].mxu1 }
 0x53a PF: > { %s3077_s6 = sld [smem:[#allocation40_spill]] }
 0x540   : > { %p1446_p2 = scmp.ne.s32.totalorder %s3077_s6, 1 }
 0x541   : > { %v989_v15 = vld [vmem:[#allocation15] sm:$0xf] (!%p1446_p2)  ;;  %vm995_vm13 = vcmask (!%p1446_p2), 1043456   ;;  %v2272_v16 = vmov (!%p1446_p2), 0.0   ;;  %vm2273_vm14 = vmmov (!%p1446_p2), 0   ;;  %vm991_vm15 = vcmask (!%p1446_p2), 64512  }
 0x542   : > { %987 = sbr.rel (%p1446_p2) target bundleno = 1595 (0x63b), region = 108  ;;  %1518 = vmatprep.subr.bf16.mxu0 (!%p1446_p2), %v2272_v16  ;;  %v1043_v17 = vsel (!%p1446_p2), %vm995_vm13, %v989_v15, 0  ;;  %1520 = vmatprep.mubr.msk.bf16.mxu0 (!%p1446_p2), %vm2273_vm14, %v2272_v16  ;;  %v1085_v18 = vld [vmem:[#allocation23] sm:$0xf] (!%p1446_p2)  ;;  %v990_v20 = vld [vmem:[#allocation22] sm:$0xf] (!%p1446_p2) }
 0x543   : > { %1519 = vmatpush3.bf16.msra.mxu0 (!%p1446_p2), %v1043_v17  ;;  %v988_v19 = vld [vmem:[%s494_s18] sm:$0xf] (!%p1446_p2)  ;;  %1512 = vmatprep.subr.bf16.mxu1 (!%p1446_p2), %v2272_v16  ;;  %v1090_v21 = vsel (!%p1446_p2), %vm995_vm13, %v1085_v18, 0  ;;  %v997_v22 = vsel (!%p1446_p2), %vm995_vm13, %v990_v20, 0  ;;  %vm1134_vm0 = vcmask (!%p1446_p2), 261120   ;;  %vm1150_vm1 = vcmask (!%p1446_p2), 1040384  }
 0x544   : > { %1524 = vmatprep.subr.bf16.mxu0 (!%p1446_p2), %v2272_v16  ;;  %1514 = vmatprep.mubr.msk.bf16.mxu1 (!%p1446_p2), %vm2273_vm14, %v2272_v16  ;;  %v1133_v43 = vld [vmem:[#allocation6] sm:$0x3] (!%p1446_p2)  ;;  %vm1153_vm2 = vcmask (!%p1446_p2), 254976  }
 0x545   : > { %1513 = vmatpush3.bf16.msra.mxu1 (!%p1446_p2), %v997_v22 }
 0x546   : > { %1521 = vmatmul.mubr.msk.bf16.vlgmr.msra.gmra.mrb[0].mxu0 (!%p1446_p2), %vm991_vm15, %v988_v19 }
 0x547   : > { %1525 = vmatpush3.bf16.msra.mxu0 (!%p1446_p2), %v1090_v21  ;;  %1526 = vmatprep.mubr.msk.bf16.mxu0 (!%p1446_p2), %vm2273_vm14, %v2272_v16 }
 0x548   : > { %1515 = vmatmul.mubr.msk.bf16.vlgmr.msra.gmra.mrb[0].mxu1 (!%p1446_p2), %vm991_vm15, %v2821_v9 }
 0x552   : > { %1527 = vmatmul.mubr.msk.bf16.vlgmr.msra.gmra.mrb[0].mxu0 %vm991_vm15, %v2823_v12 }
 0x61b   : > { %v1033_v23 = vpop.f32.mrb[0].mxu1 }
 0x61c   : > { %v1516_v24 = vpop.f32.mrb[1].mxu1 }
 0x61d   : > { %v1036_v25 = vpop.f32.mrb[2].mxu1 }
 0x61e   : > { %v1517_v26 = vpop.f32.mrb[3].mxu1 }
 0x625   : > { %v1126_v27 = vpop.f32.mrb[0].mxu0 }
 0x626   : > { %v1530_v28 = vadd.f32 %v1126_v27, %v1033_v23  ;;  %v1528_v29 = vpop.f32.mrb[1].mxu0 }
 0x627   : > { %v1129_v30 = vpop.f32.mrb[2].mxu0 }
 0x628   : > { %v1135_v31 = vsel %vm1134_vm0, %v1530_v28, 0.0  ;;  %v1142_v32 = vmul.f32 %v1530_v28, %v1530_v28  ;;  %v1529_v33 = vpop.f32.mrb[3].mxu0 }
 0x629   : > { %v1136_v34 = vrot.slane %v1135_v31, 4 }
 0x62a   : > { %v1143_v35 = vsel %vm1134_vm0, %v1142_v32, 0.0 }
 0x62b   : > { %v1137_v36 = vadd.f32 %v1136_v34, %v1135_v31  ;;  %v1144_v37 = vrot.slane %v1143_v35, 4 }
 0x62d   : > { %v1138_v38 = vrot.slane %v1137_v36, 2  ;;  %v1145_v9 = vadd.f32 %v1144_v37, %v1143_v35 }
 0x62f   : > { %v1139_v39 = vadd.f32 %v1138_v38, %v1137_v36  ;;  %v1146_v12 = vrot.slane %v1145_v9, 2 }
 0x631   : > { %v1140_v40 = vrot.slane %v1139_v39, 1  ;;  %v1147_v41 = vadd.f32 %v1146_v12, %v1145_v9 }
 0x633   : > { %v1148_v42 = vrot.slane %v1147_v41, 1  ;;  %v1141_v44 = vadd.f32 %v1140_v40, %v1139_v39 }
 0x635   : > { %v1149_v45 = vadd.f32 %v1148_v42, %v1147_v41 }
 0x637   : > { %v1151_v46 = vsel %vm1150_vm1, %v1141_v44, %v1149_v45 }
 0x638   : > { %v1152_v47 = vadd.f32 %v1151_v46, %v1133_v43 }
 0x63a   : > { %1154 = vst.msk [vmem:[#allocation6] sm:$0x3] %vm1153_vm2, %v1152_v47 }
 0x63b PF: > { %s3078_s0 = sld [smem:[#allocation39_spill]] }
 0x641   : > { %p1155_p13 = scmp.eq.s32.totalorder %s3078_s0, 1 }
 0x643   : > { %p1156_p9 = pnand %p1155_p13, %p843_p8 }
 0x644   : > { %v1160_v48 = vld [vmem:[#allocation6] sm:$0x1] (!%p1156_p9)  ;;  %v1162_v49 = vld [vmem:[#allocation6 + $0x1] sm:$0x1] (!%p1156_p9)  ;;  %v1167_v56 = vld [vmem:[#allocation19] sm:$0x1] (!%p1156_p9) }
 0x645   : > { %1159 = sbr.rel (%p1156_p9) target bundleno = 1636 (0x664), region = 112  ;;  %v1161_v50 = vmul.f32 (!%p1156_p9), 0.0625, %v1160_v48  ;;  %v1163_v51 = vmul.f32 (!%p1156_p9), 0.0625, %v1162_v49  ;;  %v1176_v57 = vshrl.u32 (!%p1156_p9), %v601_v4, 7  ;;  %v1171_v60 = vld [vmem:[#allocation21] sm:$0x1] (!%p1156_p9) }
 0x646   : > { %vm1180_vm3 = vcmask (!%p1156_p9), 1040384   ;;  %vm1182_vm4 = vcmask (!%p1156_p9), 254976  }
 0x647   : > { %v1164_v52 = vmul.f32 (!%p1156_p9), %v1161_v50, %v1161_v50  ;;  %v1177_v62 = vsub.s32 (!%p1156_p9), 0, %v1176_v57 }
 0x649   : > { %v1165_v53 = vsub.f32 (!%p1156_p9), %v1163_v51, %v1164_v52 }
 0x64b   : > { %v1166_v54 = vmax.f32 (!%p1156_p9), %v1165_v53, 0.0 }
 0x64d   : > { %v1168_v55 = vadd.f32 1e-05, %v1166_v54 }
 0x64f   : > { %1763 = vrsqrt.f32 %v1168_v55 }
 0x659   : > { %v1764_v58 = vpop.eup %1763 }
 0x65a   : > { %v1170_v59 = vmul.f32 %v1764_v58, %v1167_v56 }
 0x65c   : > { %v1172_v61 = vmul.f32 %v1170_v59, %v1161_v50 }
 0x65e   : > { %v1173_v63 = vsub.f32 %v1171_v60, %v1172_v61 }
 0x660   : > { %v1178_v0 = vrot.slane %v1173_v63, %v1177_v62 }
 0x662   : > { %v1181_v1 = vsel %vm1180_vm3, %v1170_v59, %v1178_v0 }
 0x663   : > { %1183 = vst.msk [vmem:[#allocation25] sm:$0x3] %vm1182_vm4, %v1181_v1 }
 0x664 PF: > { %p1615_p3 = scmp.eq.s32.totalorder %s2408_s12, 3  ;;  %s2274_s1 = smov [#allocation23]  }
 0x665   : > { %s1202_s18 = sshll.u32 %s2274_s1, 4  ;;  %s1203_s18 = int_to_ptr.vmem [resolvable:$true] %s1202_s18 }
 0x666   : > { %s2025_s7 = scalar_lea.vmem %s1203_s18, 64  ;;  %p2032_p10 = scmp.lt.s32.totalorder %s1203_s18, %s1203_s18 }
 0x667   : > { %p2026_p1 = scmp.ne.s32.totalorder %s1203_s18, %s2025_s7  ;;  %p2033_p4 = scmp.lt.s32.totalorder %s2025_s7, %s2025_s7 }
 0x669   : > { %p2027_p7 = pnand %p2026_p1, %p1615_p3  ;;  %p2034_p0 = por %p2033_p4, %p2032_p10 }
 0x66b   : > { %p2028_p6 = pneg %p2027_p7 }
 0x66d   : > { %p2035_p5 = pnand %p2034_p0, %p2028_p6 }
 0x66f   : > { %2038 = shalt.err (!%p2035_p5)
}
 0x670   : > { %s3080_s23 = sld [smem:[#allocation53_spill]] }
 0x676   : > { %s3081_s8 = smov %s3080_s23  ;;  %s2039_s17 = scalar_lea.hbm %s3080_s23, 64 }
 0x677   : > { %p2040_p12 = scmp.ne.s32.totalorder %s3081_s8, %s2039_s17  ;;  %p2045_p2 = scmp.lt.u32.totalorder %s2039_s17, %s3081_s8 }
 0x679   : > { %p2041_p8 = pnand %p2040_p12, %p1615_p3 }
 0x67b   : > { %p2042_p11 = pneg %p2041_p8 }
 0x67d   : > { %p2047_p13 = pnand %p2045_p2, %p2042_p11 }
 0x67f   : > { %2050 = shalt.err (!%p2047_p13)
}
 0x680   : > { %1566 = dma.vmem_to_hbm [thread:$0]  (%p1615_p3), %s1203_s18, 64, %s3081_s8, [#allocation24]  }
 0x681   : > { %s2275_s6 = smov [#allocation22]   ;;  %s2276_s19 = smov [#allocation25]  }
 0x682   : > { %s1191_s0 = sshll.u32 %s2275_s6, 4  ;;  %s1213_s1 = sshll.u32 %s2276_s19, 4  ;;  %s1192_s0 = int_to_ptr.vmem [resolvable:$true] %s1191_s0  ;;  %s1214_s1 = int_to_ptr.vmem [resolvable:$true] %s1213_s1 }
 0x683   : > { %s2051_s7 = scalar_lea.vmem %s1192_s0, 64  ;;  %p2058_p6 = scmp.lt.s32.totalorder %s1192_s0, %s1192_s0 }
 0x684   : > { %p2052_p9 = scmp.ne.s32.totalorder %s1192_s0, %s2051_s7  ;;  %p2059_p10 = scmp.lt.s32.totalorder %s2051_s7, %s2051_s7 }
 0x686   : > { %p2053_p1 = pnand %p2052_p9, %p1615_p3  ;;  %p2060_p4 = por %p2059_p10, %p2058_p6 }
 0x688   : > { %p2054_p7 = pneg %p2053_p1 }
 0x68a   : > { %p2061_p0 = pnand %p2060_p4, %p2054_p7 }
 0x68c   : > { %2064 = shalt.err (!%p2061_p0)
}
 0x68d   : > { %s3082_s23 = sld [smem:[#allocation52_spill]] }
 0x693   : > { %s3083_s2 = smov %s3082_s23  ;;  %s2065_s18 = scalar_lea.hbm %s3082_s23, 64 }
 0x694   : > { %p2066_p5 = scmp.ne.s32.totalorder %s3083_s2, %s2065_s18  ;;  %p2071_p11 = scmp.lt.u32.totalorder %s2065_s18, %s3083_s2 }
 0x696   : > { %p2067_p12 = pnand %p2066_p5, %p1615_p3 }
 0x698   : > { %p2068_p8 = pneg %p2067_p12 }
 0x69a   : > { %p2073_p2 = pnand %p2071_p11, %p2068_p8 }
 0x69c   : > { %2076 = shalt.err (!%p2073_p2)
}
 0x69d   : > { %1564 = dma.vmem_to_hbm [thread:$0]  (%p1615_p3), %s1192_s0, 64, %s3083_s2, [#allocation9]  }
 0x69e   : > { %s2077_s6 = scalar_lea.vmem %s1214_s1, 32  ;;  %p2084_p7 = scmp.lt.s32.totalorder %s1214_s1, %s1214_s1 }
 0x69f   : > { %p2078_p13 = scmp.ne.s32.totalorder %s1214_s1, %s2077_s6  ;;  %p2085_p6 = scmp.lt.s32.totalorder %s2077_s6, %s2077_s6 }
 0x6a1   : > { %p2079_p9 = pnand %p2078_p13, %p1615_p3  ;;  %p2086_p10 = por %p2085_p6, %p2084_p7 }
 0x6a3   : > { %p2080_p1 = pneg %p2079_p9 }
 0x6a5   : > { %p2087_p4 = pnand %p2086_p10, %p2080_p1 }
 0x6a7   : > { %2090 = shalt.err (!%p2087_p4)
}
 0x6a8   : > { %s3084_s20 = sld [smem:[#allocation54_spill]] }
 0x6ae   : > { %s3085_s14 = smov %s3084_s20  ;;  %s2091_s23 = scalar_lea.hbm %s3084_s20, 32 }
 0x6af   : > { %p2092_p0 = scmp.ne.s32.totalorder %s3085_s14, %s2091_s23  ;;  %p2097_p8 = scmp.lt.u32.totalorder %s2091_s23, %s3085_s14 }
 0x6b1   : > { %p2093_p5 = pnand %p2092_p0, %p1615_p3 }
 0x6b3   : > { %p2094_p12 = pneg %p2093_p5 }
 0x6b5   : > { %p2099_p11 = pnand %p2097_p8, %p2094_p12 }
 0x6b7   : > { %2102 = shalt.err (!%p2099_p11)
}
 0x6b8   : > { %1568 = dma.vmem_to_hbm [thread:$0]  (%p1615_p3), %s1214_s1, 32, %s3085_s14, [#allocation24]  }
 0x6b9   : > { %2188 = dma.done.wait (%p1615_p3), [#allocation9], 64  }
 0x6ba   : > { %2190 = vsyncadd (%p1615_p3), [#allocation9], 4294967232 }
 0x6bb   : > { %2192 = dma.done.wait (%p1615_p3), [#allocation24], 96  }
 0x6bc   : > { %2194 = vsyncadd (%p1615_p3), [#allocation24], 4294967200 }
 0x6bd PF: > { %s35_s30 = sadd.s32 1, %s2249_s30   ;;  %s3087_s17 = sld [smem:[#allocation36_spill]] }
 0x6be   : > { %p2914_p2 = scmp.ge.s32.totalorder %s35_s30, 6   ;;  %s3088_s18 = sld [smem:[#allocation37_spill]] }
 0x6bf   : > { %s3089_s20 = sld [smem:[#allocation38_spill]]  ;;  %s3090_s19 = smov %s2689_s3 }
 0x6c0   : > { %s3091_s21 = smov %s2217_s22  ;;  %s3092_s22 = smov %s2537_s5 }
 0x6c1   : > { %s3093_s23 = smov %s2225_s24  ;;  %s3094_s24 = smov %s2229_s25 }
 0x6c2   : > { %s3095_s25 = smov %s2645_s27  ;;  %s3096_s26 = smov %s2241_s28 }
 0x6c3   : > { %s3097_s27 = smov %s2245_s29  ;;  %s3098_s28 = smov %s3101_s4 }
 0x6c4   : > { %s3099_s29 = smov %s3105_s13  ;;  %34 = sbr.rel (!%p2914_p2) target bundleno = 29 (0x1d), region = 186 }
 0x6cb   :  { %1234 = vsyncpa [#allocation8], 1 }
 0x6cc   :  { %1236 = vsyncpa [#allocation8 + $0x1], 1 }
 0x6cd   :  { %1237 = vsyncpa [#allocation11], 1 }
 0x6ce   :  { %1239 = vsyncpa [#allocation11 + $0x1], 1 }
 0x6cf   :  { %1240 = vsyncpa [#allocation14], 1 }
 0x6d0   :  { %1242 = vsyncpa [#allocation14 + $0x1], 1 }
 0x6d1   :  { %1243 = vsyncpa [#allocation17], 1 }
 0x6d2   :  { %1244 = vsyncpa [#allocation20], 1 }
 0x6d3   :  { %1245 = vsyncpa [#allocation9], 1 }
 0x6d4   :  { %1247 = vsyncpa [#allocation9 + $0x1], 1 }
 0x6d5   :  { %1248 = vsyncpa [#allocation24], 1 }

</bundles_post_ra>
